<compile_context>
chip_gen: v7x
topology: tpu7x:2x2x1
jax: 0.10.0
libtpu: 0.0.40
codegen_flags: <defaults>
</compile_context>

<pallas_src>
import math
import jax
import jax.numpy as jnp
from jax.experimental import pallas as pl
from jax.experimental.pallas import tpu as pltpu

# ----------------------------- configuration ------------------------------- #
H = 32          # hidden_size
I = 64          # config.intermediate_size
NH = 4          # num_attention_heads
DH = H // NH    # per-head dim
OPS = 6         # op_nums
CONSTS = 4      # Prediction.input_size (constant embeddings)
NUM = 5         # quantity embeddings in num_pades
L = CONSTS + NUM
LP = 16         # L padded to a sublane multiple
S = 8           # encoder sequence length
B = 2           # batch size
EPS = 1e-12
NEG_INF = -1e9
BLK = 128

# -------------------- activation slab layout (rows / lanes) ----------------- #
R_C, R_L, R_ENC, R_NEMB = 0, 8, 16, 32      # row offsets (all 8-aligned)
ACT_ROWS, ACT_LANES = 64, 128
AUX_HL = H                                   # lane 32, rows R_C:R_C+B    has_left
AUX_SM = H                                   # lane 32, rows R_ENC:+B*S   seq mask
AUX_NM = H + 8                               # lanes 40:56, rows R_C:+B   num mask

# ----------------------- weight slab layout (lane blocks) ------------------- #
O_GATE_C = 0 * BLK
O_GATE_L = 1 * BLK
O_KV     = 2 * BLK
O_SEN    = 3 * BLK
O_Q      = 4 * BLK
O_MH     = 5 * BLK            # head block-diagonal indicator (H, H)
O_O      = 6 * BLK
O_EXP    = 7 * BLK
O_MIX    = 8 * BLK            # [Score.lin_expand hidden-half | ops]
O_COL    = 9 * BLK            # lin_collapse (I rows)
O_SC     = 10 * BLK           # Score.lin_collapse (I rows)
O_VEC    = 11 * BLK           # bias / LayerNorm / score rows (rows 0:15)
O_INDJ   = 12 * BLK           # indJ gather matrix (B*LP, LP)
W_LANES  = 13 * BLK
W_ROWS   = 64
FUSED_LANES = 4 * BLK         # blocks consumed by the fused stacked-row matmul

(R_B_GATE, R_B_Q, R_B_KV, R_B_O, R_B_EXP, R_B_MIX, R_B_COL, R_B_SC,
 R_G_MEM, R_B_MEM, R_G_OUT, R_B_OUT, R_G_S, R_B_S, R_SCORE) = range(15)


# ------------------------------ math helpers -------------------------------- #
def _gelu_bert(x):
    return 0.5 * x * (1.0 + jnp.tanh(0.7978845608028654 * (x + 0.044715 * x * x * x)))


def _sigmoid(x):
    return 1.0 / (1.0 + jnp.exp(-x))        # exact (review: no approx reciprocal)


def _layer_norm(x, gamma, beta):
    mu = jnp.mean(x, axis=-1, keepdims=True)
    xc = x - mu
    var = jnp.mean(xc * xc, axis=-1, keepdims=True)
    return xc * jax.lax.rsqrt(var + EPS) * gamma + beta


# --------------------------------- kernel ----------------------------------- #
def prediction_kernel(act_ref, w_ref, out_ref):
    f32 = jnp.float32
    H2, H4 = 2 * H, 4 * H

    def vrow(r, n):                                    # (1, n) bias / LN row
        return w_ref[r:r + 1, O_VEC:O_VEC + n]

    # ---- one stacked-row matmul for every data-independent H-input projection ----
    lhs = act_ref[:, 0:H]                                               # (64, H)
    z_all = jnp.dot(lhs, w_ref[0:H, 0:FUSED_LANES],
                    preferred_element_type=f32)                         # (64, 512)
    zc = z_all[R_C:R_C + B, O_GATE_C:O_GATE_C + H4]                     # (B, 4H)
    zl = z_all[R_L:R_L + B, O_GATE_L:O_GATE_L + H4]                     # (B, 4H)
    kv = z_all[R_ENC:R_ENC + B * S, O_KV:O_KV + H2]                     # (B*S, 2H)
    num_part = z_all[R_NEMB:R_NEMB + B * LP, O_SEN:O_SEN + I]           # (B*LP, I)

    # ---------------- node gating (concat_l/lg vs concat_r/rg fused) ----------------
    z = zc + zl + vrow(R_B_GATE, H4)                                    # (B, 4H)
    hl = act_ref[R_C:R_C + B, AUX_HL:AUX_HL + 1]                        # (B, 1)
    z_sel = jnp.where(hl > 0.5, z[:, H2:H4], z[:, 0:H2])                # (B, 2H)
    node = jnp.tanh(z_sel[:, :H]) * _sigmoid(z_sel[:, H:H2])            # (B, H)

    # ---------------- multi-head attention, all 2-D (rows = b*S + s) ----------------
    q = (jnp.dot(node, w_ref[0:H, O_Q:O_Q + H], preferred_element_type=f32)
         + vrow(R_B_Q, H))                                              # (B, H)
    kv = kv + vrow(R_B_KV, H2)
    k = kv[:, 0:H]
    v = kv[:, H:H2]
    q_rows = jnp.concatenate(
        [jnp.broadcast_to(q[b:b + 1, :], (S, H)) for b in range(B)], axis=0)  # (B*S, H)
    # per-head dot products, broadcast back to lanes, via precomputed block-diag indicator
    logits = jnp.dot(q_rows * k, w_ref[0:H, O_MH:O_MH + H],
                     preferred_element_type=f32) * (1.0 / math.sqrt(DH))      # (B*S, H)
    smask = act_ref[R_ENC:R_ENC + B * S, AUX_SM:AUX_SM + 1]             # (B*S, 1)
    logits = jnp.where(smask > 0.5, NEG_INF, logits)
    m = jnp.concatenate(
        [jnp.broadcast_to(jnp.max(logits[b * S:(b + 1) * S], axis=0, keepdims=True),
                          (S, H)) for b in range(B)], axis=0)           # (B*S, H)
    e = jnp.exp(logits - m)
    ev = e * v
    ctx_num = jnp.concatenate(
        [jnp.sum(ev[b * S:(b + 1) * S], axis=0, keepdims=True) for b in range(B)], axis=0)
    denom = jnp.concatenate(
        [jnp.sum(e[b * S:(b + 1) * S], axis=0, keepdims=True) for b in range(B)], axis=0)
    ctx = ctx_num / denom                                               # (B, H) exact
    ctx = (jnp.dot(ctx, w_ref[0:H, O_O:O_O + H], preferred_element_type=f32)
           + vrow(R_B_O, H))

    # ---------------- residual + norm_mem + FFN + norm_out ----------------
    x = _layer_norm(node + ctx, vrow(R_G_MEM, H), vrow(R_B_MEM, H))
    hmid = _gelu_bert(jnp.dot(x, w_ref[0:H, O_EXP:O_EXP + I],
                              preferred_element_type=f32) + vrow(R_B_EXP, I))
    ff = (jnp.dot(hmid, w_ref[0:I, O_COL:O_COL + H], preferred_element_type=f32)
          + vrow(R_B_COL, H))
    ff = ff + ff                    # current_node + dropout_out(current_node), eval mode
    y = _layer_norm(ff, vrow(R_G_OUT, H), vrow(R_B_OUT, H))             # (B, H)

    # ---------------- ops head + Score (hidden-expand fused with ops) ----------------
    mix = (jnp.dot(y, w_ref[0:H, O_MIX:O_MIX + I + OPS], preferred_element_type=f32)
           + vrow(R_B_MIX, I + OPS))                                    # (B, I+OPS)
    hid = mix[:, 0:I]
    op_score = mix[:, I:I + OPS]

    hid_rows = jnp.concatenate(
        [jnp.broadcast_to(hid[b:b + 1, :], (LP, I)) for b in range(B)], axis=0)  # (B*LP, I)
    energy = _gelu_bert(hid_rows + num_part)                            # (B*LP, I)
    s = (jnp.dot(energy, w_ref[0:I, O_SC:O_SC + H], preferred_element_type=f32)
         + vrow(R_B_SC, H))
    s = s + s                       # score + dropout_out(score), eval mode
    s = _layer_norm(s, vrow(R_G_S, H), vrow(R_B_S, H))                  # (B*LP, H)
    t = jnp.sum(s * vrow(R_SCORE, H), axis=-1, keepdims=True)           # (B*LP, 1)
    g = w_ref[0:B * LP, O_INDJ:O_INDJ + LP] * t                         # (B*LP, LP)
    num_score = jnp.concatenate(
        [jnp.sum(g[b * LP:(b + 1) * LP], axis=0, keepdims=True) for b in range(B)],
        axis=0)                                                         # (B, LP)
    nmask = act_ref[R_C:R_C + B, AUX_NM:AUX_NM + LP]
    num_score = jnp.where(nmask > 0.5, -jnp.inf, num_score)

    # ---------------- single lane-dense (B, 128) output store ----------------
    pad = jnp.zeros((B, ACT_LANES - (LP + OPS + H)), f32)
    out_ref[...] = jnp.concatenate([num_score, op_score, y, pad],
                                   axis=1).astype(out_ref.dtype)


# ---------------------------- weight packing (one-time) ---------------------- #
def _put(w, r0, c0, m):
    m = jnp.asarray(m, jnp.float32)
    return w.at[r0:r0 + m.shape[0], c0:c0 + m.shape[1]].set(m)


def pack_params(p):
    """Pack every constant (weights, biases, LN params, indicators) into ONE slab."""
    H2 = 2 * H
    w = jnp.zeros((W_ROWS, W_LANES), jnp.float32)

    gate_c = jnp.concatenate([p["w_cl"], p["w_clg"], p["w_cr"][H:], p["w_crg"][H:]], axis=1)
    gate_l = jnp.concatenate([jnp.zeros((H, H2), jnp.float32),
                              p["w_cr"][:H], p["w_crg"][:H]], axis=1)
    w = _put(w, 0, O_GATE_C, gate_c)
    w = _put(w, 0, O_GATE_L, gate_l)
    w = _put(w, 0, O_KV, jnp.concatenate([p["w_k"], p["w_v"]], axis=1))
    w = _put(w, 0, O_SEN, p["w_se"][H:])
    w = _put(w, 0, O_Q, p["w_q"])
    lane = jnp.arange(H)
    m_head = (lane[:, None] // DH == lane[None, :] // DH).astype(jnp.float32)
    w = _put(w, 0, O_MH, m_head)
    w = _put(w, 0, O_O, p["w_o"])
    w = _put(w, 0, O_EXP, p["w_exp"])
    w = _put(w, 0, O_MIX, jnp.concatenate([p["w_se"][:H], p["w_ops"]], axis=1))
    w = _put(w, 0, O_COL, p["w_col"])
    w = _put(w, 0, O_SC, p["w_sc"])

    vec_rows = [
        (R_B_GATE, jnp.concatenate([p["b_cl"], p["b_clg"], p["b_cr"], p["b_crg"]], axis=1)),
        (R_B_Q, p["b_q"]),
        (R_B_KV, jnp.concatenate([p["b_k"], p["b_v"]], axis=1)),
        (R_B_O, p["b_o"]),
        (R_B_EXP, p["b_exp"]),
        (R_B_MIX, jnp.concatenate([p["b_se"], p["b_ops"]], axis=1)),
        (R_B_COL, p["b_col"]),
        (R_B_SC, p["b_sc"]),
        (R_G_MEM, p["g_mem"]), (R_B_MEM, p["b_mem"]),
        (R_G_OUT, p["g_out"]), (R_B_OUT, p["b_out"]),
        (R_G_S, p["g_s"]), (R_B_S, p["b_s"]),
        (R_SCORE, p["w_score"].reshape(1, H)),
    ]
    for r, v in vec_rows:
        w = _put(w, r, O_VEC, v)

    rowi = jnp.arange(B * LP)
    indj = (rowi[:, None] % LP == jnp.arange(LP)[None, :]).astype(jnp.float32)
    w = _put(w, 0, O_INDJ, indj)

    return {"wmat": w, "embedding_weight": p["embedding_weight"]}


# ------------------------------ wrapper (glue) ------------------------------ #
def prediction_forward(packed, current_emb, left_child, has_left,
                       encoder_outputs, num_pades, seq_mask, mask_nums):
    """
    current_emb:     (B, 1, H)  top-of-stack embedding (padding_hidden if stack empty)
    left_child:      (B, 1, H)  left-child embedding (zeros if None)
    has_left:        (B,)       1.0 where a left child exists
    encoder_outputs: (S, B, H)  PyTorch layout
    num_pades:       (B, NUM, H)
    seq_mask:        (B, S)     1 where key should be ignored
    mask_nums:       (B, L)     1 where number slot is masked
    """
    bsz = current_emb.shape[0]
    assert bsz == B and encoder_outputs.shape[0] == S
    f32 = jnp.float32

    enc_rows = jnp.transpose(encoder_outputs, (1, 0, 2)).reshape(bsz * S, H)
    emb_w = jnp.broadcast_to(packed["embedding_weight"], (bsz, CONSTS, H))
    embedding_weight = jnp.concatenate([emb_w, num_pades], axis=1)        # (B, L, H)
    nemb_rows = jnp.pad(embedding_weight,
                        ((0, 0), (0, LP - L), (0, 0))).reshape(bsz * LP, H)
    nmask = jnp.pad(mask_nums.astype(f32), ((0, 0), (0, LP - L)), constant_values=1.0)

    act = jnp.zeros((ACT_ROWS, ACT_LANES), f32)
    act = act.at[R_C:R_C + bsz, 0:H].set(current_emb.reshape(bsz, H).astype(f32))
    act = act.at[R_L:R_L + bsz, 0:H].set(left_child.reshape(bsz, H).astype(f32))
    act = act.at[R_ENC:R_ENC + bsz * S, 0:H].set(enc_rows.astype(f32))
    act = act.at[R_NEMB:R_NEMB + bsz * LP, 0:H].set(nemb_rows.astype(f32))
    act = act.at[R_C:R_C + bsz, AUX_HL].set(has_left.astype(f32))
    act = act.at[R_ENC:R_ENC + bsz * S, AUX_SM].set(
        seq_mask.astype(f32).reshape(bsz * S))
    act = act.at[R_C:R_C + bsz, AUX_NM:AUX_NM + LP].set(nmask)

    vmem = pl.BlockSpec(memory_space=pltpu.MemorySpace.VMEM)
    out = pl.pallas_call(
        prediction_kernel,
        out_shape=jax.ShapeDtypeStruct((bsz, ACT_LANES), f32),
        in_specs=[vmem, vmem],
        out_specs=vmem,
    )(act, packed["wmat"])

    num_score = out[:, :L]
    op_score = out[:, LP:LP + OPS]
    current_node = out[:, LP + OPS:LP + OPS + H].reshape(bsz, 1, H)
    return num_score, op_score, current_node, embedding_weight


# --------------------------- deterministic params --------------------------- #
def init_params(key):
    keys = iter(jax.random.split(key, 64))

    def lin(din, dout):
        wq = jax.random.normal(next(keys), (din, dout), jnp.float32) * 0.05
        bq = jax.random.normal(next(keys), (1, dout), jnp.float32) * 0.05
        return wq, bq

    p = {}
    p["embedding_weight"] = jax.random.normal(next(keys), (1, CONSTS, H), jnp.float32)
    p["w_cl"], p["b_cl"] = lin(H, H)
    p["w_clg"], p["b_clg"] = lin(H, H)
    p["w_cr"], p["b_cr"] = lin(2 * H, H)
    p["w_crg"], p["b_crg"] = lin(2 * H, H)
    p["w_q"], p["b_q"] = lin(H, H)
    p["w_k"], p["b_k"] = lin(H, H)
    p["w_v"], p["b_v"] = lin(H, H)
    p["w_o"], p["b_o"] = lin(H, H)
    p["g_mem"], p["b_mem"] = jnp.ones((1, H), jnp.float32), jnp.zeros((1, H), jnp.float32)
    p["w_exp"], p["b_exp"] = lin(H, I)
    p["w_col"], p["b_col"] = lin(I, H)
    p["g_out"], p["b_out"] = jnp.ones((1, H), jnp.float32), jnp.zeros((1, H), jnp.float32)
    p["w_ops"], p["b_ops"] = lin(H, OPS)
    p["w_se"], p["b_se"] = lin(2 * H, I)      # Score.lin_expand
    p["w_sc"], p["b_sc"] = lin(I, H)          # Score.lin_collapse
    p["g_s"], p["b_s"] = jnp.ones((1, H), jnp.float32), jnp.zeros((1, H), jnp.float32)
    p["w_score"] = jax.random.normal(next(keys), (H, 1), jnp.float32) * 0.05
    return p


# ----------------------------------- main ----------------------------------- #
if __name__ == "__main__":
    key = jax.random.PRNGKey(0)
    kp, kd = jax.random.split(key)
    params = init_params(kp)
    packed = pack_params(params)           # one-time weight packing
    ks = jax.random.split(kd, 8)

    # Simulated tree state: batch 0 has an empty stack (padding) and no left child,
    # batch 1 has a current node and a left child.
    padding_hidden = jnp.zeros((1, H), jnp.float32)
    node1_emb = jax.random.normal(ks[0], (1, H), jnp.float32)
    current_emb = jnp.stack([padding_hidden, node1_emb], axis=0)             # (B, 1, H)
    left1 = jax.random.normal(ks[1], (1, H), jnp.float32)
    left_child = jnp.stack([jnp.zeros((1, H), jnp.float32), left1], axis=0)  # (B, 1, H)
    has_left = jnp.array([0.0, 1.0], jnp.float32)

    encoder_outputs = jax.random.normal(ks[2], (S, B, H), jnp.float32)       # (S, B, H)
    num_pades = jax.random.normal(ks[3], (B, NUM, H), jnp.float32)
    seq_mask = jnp.array([[0, 0, 0, 0, 0, 0, 1, 1],
                          [0, 0, 0, 0, 0, 1, 1, 1]], jnp.float32)            # (B, S)
    mask_nums = jnp.zeros((B, L), jnp.float32).at[0, L - 2:].set(1.0)        # (B, L)

    fwd = jax.jit(prediction_forward)
    num_score, op_score, current_node, embedding_weight = fwd(
        packed, current_emb, left_child, has_left,
        encoder_outputs, num_pades, seq_mask, mask_nums)

    jax.block_until_ready((num_score, op_score, current_node, embedding_weight))
    assert num_score.shape == (B, L)
    assert op_score.shape == (B, OPS)
    assert current_node.shape == (B, 1, H)
    assert embedding_weight.shape == (B, L, H)
    assert bool(jnp.isneginf(num_score[0, L - 1]))          # masked slot -> -inf
    assert bool(jnp.all(jnp.isfinite(op_score)))
    assert bool(jnp.all(jnp.isfinite(current_node)))
    print("KERNEL_OK")
</pallas_src>

<mosaic_0001>
module attributes {stable_mosaic.version = 11 : i64} {
  func.func @prediction_kernel(%arg0: memref<64x128xf32, #tpu.memory_space<vmem>>, %arg1: memref<64x1664xf32, #tpu.memory_space<vmem>>, %arg2: memref<2x128xf32, #tpu.memory_space<vmem>>) attributes {dimension_semantics = [], scalar_prefetch = 0 : i64, scratch_operands = 0 : i64, tpu.core_type = #tpu.core_type<tc>} {
    %c0 = arith.constant 0 : index
    %c0_0 = arith.constant 0 : index
    %0 = vector.load %arg0[%c0, %c0_0] : memref<64x128xf32, #tpu.memory_space<vmem>>, vector<64x32xf32>
    %c0_1 = arith.constant 0 : index
    %c0_2 = arith.constant 0 : index
    %1 = vector.load %arg1[%c0_1, %c0_2] : memref<64x1664xf32, #tpu.memory_space<vmem>>, vector<32x512xf32>
    %cst = arith.constant dense<0.000000e+00> : vector<64x512xf32>
    %2 = tpu.matmul %0, %1, %cst {dimension_numbers = #tpu.dot_dimension_numbers<[1], [0], [0], [1], [0, 0, 1, 1], [], []>} : vector<64x32xf32>, vector<32x512xf32>, vector<64x512xf32> -> vector<64x512xf32>
    %3 = vector.extract_strided_slice %2 {offsets = [0, 0], sizes = [2, 128], strides = [1, 1]} : vector<64x512xf32> to vector<2x128xf32>
    %4 = vector.extract_strided_slice %2 {offsets = [8, 128], sizes = [2, 128], strides = [1, 1]} : vector<64x512xf32> to vector<2x128xf32>
    %5 = vector.extract_strided_slice %2 {offsets = [16, 256], sizes = [16, 64], strides = [1, 1]} : vector<64x512xf32> to vector<16x64xf32>
    %6 = vector.extract_strided_slice %2 {offsets = [32, 384], sizes = [32, 64], strides = [1, 1]} : vector<64x512xf32> to vector<32x64xf32>
    %7 = arith.addf %3, %4 : vector<2x128xf32>
    %c0_3 = arith.constant 0 : index
    %c1408 = arith.constant 1408 : index
    %8 = vector.load %arg1[%c0_3, %c1408] : memref<64x1664xf32, #tpu.memory_space<vmem>>, vector<1x128xf32>
    %9 = vector.broadcast %8 : vector<1x128xf32> to vector<2x128xf32>
    %10 = arith.addf %7, %9 : vector<2x128xf32>
    %c0_4 = arith.constant 0 : index
    %c32 = arith.constant 32 : index
    %11 = vector.load %arg0[%c0_4, %c32] : memref<64x128xf32, #tpu.memory_space<vmem>>, vector<2x1xf32>
    %cst_5 = arith.constant 5.000000e-01 : f32
    %12 = vector.broadcast %cst_5 : f32 to vector<2x1xf32>
    %13 = arith.cmpf ogt, %11, %12 : vector<2x1xf32>
    %14 = vector.extract_strided_slice %10 {offsets = [0, 64], sizes = [2, 64], strides = [1, 1]} : vector<2x128xf32> to vector<2x64xf32>
    %15 = vector.extract_strided_slice %10 {offsets = [0, 0], sizes = [2, 64], strides = [1, 1]} : vector<2x128xf32> to vector<2x64xf32>
    %16 = vector.shape_cast %13 : vector<2x1xi1> to vector<2x1xi1>
    %17 = vector.broadcast %16 : vector<2x1xi1> to vector<2x64xi1>
    %18 = arith.select %17, %14, %15 : vector<2x64xi1>, vector<2x64xf32>
    %19 = vector.extract_strided_slice %18 {offsets = [0, 0], sizes = [2, 32], strides = [1, 1]} : vector<2x64xf32> to vector<2x32xf32>
    %20 = math.tanh %19 : vector<2x32xf32>
    %21 = vector.extract_strided_slice %18 {offsets = [0, 32], sizes = [2, 32], strides = [1, 1]} : vector<2x64xf32> to vector<2x32xf32>
    %cst_6 = arith.constant 0.000000e+00 : f32
    %22 = vector.broadcast %cst_6 : f32 to vector<2x32xf32>
    %23 = arith.subf %22, %21 : vector<2x32xf32>
    %24 = math.exp %23 : vector<2x32xf32>
    %cst_7 = arith.constant 1.000000e+00 : f32
    %25 = vector.broadcast %cst_7 : f32 to vector<2x32xf32>
    %26 = arith.addf %25, %24 : vector<2x32xf32>
    %cst_8 = arith.constant 1.000000e+00 : f32
    %27 = vector.broadcast %cst_8 : f32 to vector<2x32xf32>
    %28 = arith.divf %27, %26 : vector<2x32xf32>
    %29 = arith.mulf %20, %28 : vector<2x32xf32>
    %c0_9 = arith.constant 0 : index
    %c512 = arith.constant 512 : index
    %30 = vector.load %arg1[%c0_9, %c512] : memref<64x1664xf32, #tpu.memory_space<vmem>>, vector<32x32xf32>
    %cst_10 = arith.constant dense<0.000000e+00> : vector<2x32xf32>
    %31 = tpu.matmul %29, %30, %cst_10 {dimension_numbers = #tpu.dot_dimension_numbers<[1], [0], [0], [1], [0, 0, 1, 1], [], []>} : vector<2x32xf32>, vector<32x32xf32>, vector<2x32xf32> -> vector<2x32xf32>
    %c1 = arith.constant 1 : index
    %c1408_11 = arith.constant 1408 : index
    %32 = vector.load %arg1[%c1, %c1408_11] : memref<64x1664xf32, #tpu.memory_space<vmem>>, vector<1x32xf32>
    %33 = vector.broadcast %32 : vector<1x32xf32> to vector<2x32xf32>
    %34 = arith.addf %31, %33 : vector<2x32xf32>
    %c2 = arith.constant 2 : index
    %c1408_12 = arith.constant 1408 : index
    %35 = vector.load %arg1[%c2, %c1408_12] : memref<64x1664xf32, #tpu.memory_space<vmem>>, vector<1x64xf32>
    %36 = vector.broadcast %35 : vector<1x64xf32> to vector<16x64xf32>
    %37 = arith.addf %5, %36 : vector<16x64xf32>
    %38 = vector.extract_strided_slice %37 {offsets = [0, 0], sizes = [16, 32], strides = [1, 1]} : vector<16x64xf32> to vector<16x32xf32>
    %39 = vector.extract_strided_slice %37 {offsets = [0, 32], sizes = [16, 32], strides = [1, 1]} : vector<16x64xf32> to vector<16x32xf32>
    %40 = vector.extract_strided_slice %34 {offsets = [0, 0], sizes = [1, 32], strides = [1, 1]} : vector<2x32xf32> to vector<1x32xf32>
    %41 = vector.shape_cast %40 : vector<1x32xf32> to vector<1x32xf32>
    %42 = vector.broadcast %41 : vector<1x32xf32> to vector<8x32xf32>
    %43 = vector.extract_strided_slice %34 {offsets = [1, 0], sizes = [1, 32], strides = [1, 1]} : vector<2x32xf32> to vector<1x32xf32>
    %44 = vector.shape_cast %43 : vector<1x32xf32> to vector<1x32xf32>
    %45 = vector.broadcast %44 : vector<1x32xf32> to vector<8x32xf32>
    %46 = tpu.concatenate %42, %45 in 0 : vector<8x32xf32>, vector<8x32xf32> -> vector<16x32xf32>
    %47 = arith.mulf %46, %38 : vector<16x32xf32>
    %c0_13 = arith.constant 0 : index
    %c640 = arith.constant 640 : index
    %48 = vector.load %arg1[%c0_13, %c640] : memref<64x1664xf32, #tpu.memory_space<vmem>>, vector<32x32xf32>
    %cst_14 = arith.constant dense<0.000000e+00> : vector<16x32xf32>
    %49 = tpu.matmul %47, %48, %cst_14 {dimension_numbers = #tpu.dot_dimension_numbers<[1], [0], [0], [1], [0, 0, 1, 1], [], []>} : vector<16x32xf32>, vector<32x32xf32>, vector<16x32xf32> -> vector<16x32xf32>
    %cst_15 = arith.constant 0.353553385 : f32
    %50 = vector.broadcast %cst_15 : f32 to vector<16x32xf32>
    %51 = arith.mulf %49, %50 : vector<16x32xf32>
    %c16 = arith.constant 16 : index
    %c32_16 = arith.constant 32 : index
    %52 = vector.load %arg0[%c16, %c32_16] : memref<64x128xf32, #tpu.memory_space<vmem>>, vector<16x1xf32>
    %cst_17 = arith.constant 5.000000e-01 : f32
    %53 = vector.broadcast %cst_17 : f32 to vector<16x1xf32>
    %54 = arith.cmpf ogt, %52, %53 : vector<16x1xf32>
    %cst_18 = arith.constant -1.000000e+09 : f32
    %55 = vector.shape_cast %54 : vector<16x1xi1> to vector<16x1xi1>
    %56 = vector.broadcast %55 : vector<16x1xi1> to vector<16x32xi1>
    %57 = vector.broadcast %cst_18 : f32 to vector<16x32xf32>
    %58 = arith.select %56, %57, %51 : vector<16x32xi1>, vector<16x32xf32>
    %59 = vector.extract_strided_slice %58 {offsets = [0, 0], sizes = [8, 32], strides = [1, 1]} : vector<16x32xf32> to vector<8x32xf32>
    %cst_19 = arith.constant dense<0xFF800000> : vector<32xf32>
    %60 = vector.multi_reduction <maximumf>, %59, %cst_19 [0] : vector<8x32xf32> to vector<32xf32>
    %61 = vector.shape_cast %60 : vector<32xf32> to vector<1x32xf32>
    %62 = vector.shape_cast %61 : vector<1x32xf32> to vector<1x32xf32>
    %63 = vector.broadcast %62 : vector<1x32xf32> to vector<8x32xf32>
    %64 = vector.extract_strided_slice %58 {offsets = [8, 0], sizes = [8, 32], strides = [1, 1]} : vector<16x32xf32> to vector<8x32xf32>
    %cst_20 = arith.constant dense<0xFF800000> : vector<32xf32>
    %65 = vector.multi_reduction <maximumf>, %64, %cst_20 [0] : vector<8x32xf32> to vector<32xf32>
    %66 = vector.shape_cast %65 : vector<32xf32> to vector<1x32xf32>
    %67 = vector.shape_cast %66 : vector<1x32xf32> to vector<1x32xf32>
    %68 = vector.broadcast %67 : vector<1x32xf32> to vector<8x32xf32>
    %69 = tpu.concatenate %63, %68 in 0 : vector<8x32xf32>, vector<8x32xf32> -> vector<16x32xf32>
    %70 = arith.subf %58, %69 : vector<16x32xf32>
    %71 = math.exp %70 : vector<16x32xf32>
    %72 = arith.mulf %71, %39 : vector<16x32xf32>
    %73 = vector.extract_strided_slice %72 {offsets = [0, 0], sizes = [8, 32], strides = [1, 1]} : vector<16x32xf32> to vector<8x32xf32>
    %cst_21 = arith.constant dense<0.000000e+00> : vector<32xf32>
    %74 = vector.multi_reduction <add>, %73, %cst_21 [0] : vector<8x32xf32> to vector<32xf32>
    %75 = vector.shape_cast %74 : vector<32xf32> to vector<1x32xf32>
    %76 = vector.extract_strided_slice %72 {offsets = [8, 0], sizes = [8, 32], strides = [1, 1]} : vector<16x32xf32> to vector<8x32xf32>
    %cst_22 = arith.constant dense<0.000000e+00> : vector<32xf32>
    %77 = vector.multi_reduction <add>, %76, %cst_22 [0] : vector<8x32xf32> to vector<32xf32>
    %78 = vector.shape_cast %77 : vector<32xf32> to vector<1x32xf32>
    %79 = tpu.concatenate %75, %78 in 0 : vector<1x32xf32>, vector<1x32xf32> -> vector<2x32xf32>
    %80 = vector.extract_strided_slice %71 {offsets = [0, 0], sizes = [8, 32], strides = [1, 1]} : vector<16x32xf32> to vector<8x32xf32>
    %cst_23 = arith.constant dense<0.000000e+00> : vector<32xf32>
    %81 = vector.multi_reduction <add>, %80, %cst_23 [0] : vector<8x32xf32> to vector<32xf32>
    %82 = vector.shape_cast %81 : vector<32xf32> to vector<1x32xf32>
    %83 = vector.extract_strided_slice %71 {offsets = [8, 0], sizes = [8, 32], strides = [1, 1]} : vector<16x32xf32> to vector<8x32xf32>
    %cst_24 = arith.constant dense<0.000000e+00> : vector<32xf32>
    %84 = vector.multi_reduction <add>, %83, %cst_24 [0] : vector<8x32xf32> to vector<32xf32>
    %85 = vector.shape_cast %84 : vector<32xf32> to vector<1x32xf32>
    %86 = tpu.concatenate %82, %85 in 0 : vector<1x32xf32>, vector<1x32xf32> -> vector<2x32xf32>
    %87 = arith.divf %79, %86 : vector<2x32xf32>
    %c0_25 = arith.constant 0 : index
    %c768 = arith.constant 768 : index
    %88 = vector.load %arg1[%c0_25, %c768] : memref<64x1664xf32, #tpu.memory_space<vmem>>, vector<32x32xf32>
    %cst_26 = arith.constant dense<0.000000e+00> : vector<2x32xf32>
    %89 = tpu.matmul %87, %88, %cst_26 {dimension_numbers = #tpu.dot_dimension_numbers<[1], [0], [0], [1], [0, 0, 1, 1], [], []>} : vector<2x32xf32>, vector<32x32xf32>, vector<2x32xf32> -> vector<2x32xf32>
    %c3 = arith.constant 3 : index
    %c1408_27 = arith.constant 1408 : index
    %90 = vector.load %arg1[%c3, %c1408_27] : memref<64x1664xf32, #tpu.memory_space<vmem>>, vector<1x32xf32>
    %91 = vector.broadcast %90 : vector<1x32xf32> to vector<2x32xf32>
    %92 = arith.addf %89, %91 : vector<2x32xf32>
    %93 = arith.addf %29, %92 : vector<2x32xf32>
    %c8 = arith.constant 8 : index
    %c1408_28 = arith.constant 1408 : index
    %94 = vector.load %arg1[%c8, %c1408_28] : memref<64x1664xf32, #tpu.memory_space<vmem>>, vector<1x32xf32>
    %c9 = arith.constant 9 : index
    %c1408_29 = arith.constant 1408 : index
    %95 = vector.load %arg1[%c9, %c1408_29] : memref<64x1664xf32, #tpu.memory_space<vmem>>, vector<1x32xf32>
    %cst_30 = arith.constant dense<0.000000e+00> : vector<2xf32>
    %96 = vector.multi_reduction <add>, %93, %cst_30 [1] : vector<2x32xf32> to vector<2xf32>
    %97 = vector.shape_cast %96 : vector<2xf32> to vector<2x1xf32>
    %cst_31 = arith.constant 3.200000e+01 : f32
    %98 = vector.broadcast %cst_31 : f32 to vector<2x1xf32>
    %99 = arith.divf %97, %98 : vector<2x1xf32>
    %100 = vector.broadcast %99 : vector<2x1xf32> to vector<2x32xf32>
    %101 = arith.subf %93, %100 : vector<2x32xf32>
    %102 = arith.mulf %101, %101 : vector<2x32xf32>
    %cst_32 = arith.constant dense<0.000000e+00> : vector<2xf32>
    %103 = vector.multi_reduction <add>, %102, %cst_32 [1] : vector<2x32xf32> to vector<2xf32>
    %104 = vector.shape_cast %103 : vector<2xf32> to vector<2x1xf32>
    %cst_33 = arith.constant 3.200000e+01 : f32
    %105 = vector.broadcast %cst_33 : f32 to vector<2x1xf32>
    %106 = arith.divf %104, %105 : vector<2x1xf32>
    %cst_34 = arith.constant 9.99999996E-13 : f32
    %107 = vector.broadcast %cst_34 : f32 to vector<2x1xf32>
    %108 = arith.addf %106, %107 : vector<2x1xf32>
    %109 = math.rsqrt %108 : vector<2x1xf32>
    %110 = vector.broadcast %109 : vector<2x1xf32> to vector<2x32xf32>
    %111 = arith.mulf %101, %110 : vector<2x32xf32>
    %112 = vector.broadcast %94 : vector<1x32xf32> to vector<2x32xf32>
    %113 = arith.mulf %111, %112 : vector<2x32xf32>
    %114 = vector.broadcast %95 : vector<1x32xf32> to vector<2x32xf32>
    %115 = arith.addf %113, %114 : vector<2x32xf32>
    %c0_35 = arith.constant 0 : index
    %c896 = arith.constant 896 : index
    %116 = vector.load %arg1[%c0_35, %c896] : memref<64x1664xf32, #tpu.memory_space<vmem>>, vector<32x64xf32>
    %cst_36 = arith.constant dense<0.000000e+00> : vector<2x64xf32>
    %117 = tpu.matmul %115, %116, %cst_36 {dimension_numbers = #tpu.dot_dimension_numbers<[1], [0], [0], [1], [0, 0, 1, 1], [], []>} : vector<2x32xf32>, vector<32x64xf32>, vector<2x64xf32> -> vector<2x64xf32>
    %c4 = arith.constant 4 : index
    %c1408_37 = arith.constant 1408 : index
    %118 = vector.load %arg1[%c4, %c1408_37] : memref<64x1664xf32, #tpu.memory_space<vmem>>, vector<1x64xf32>
    %119 = vector.broadcast %118 : vector<1x64xf32> to vector<2x64xf32>
    %120 = arith.addf %117, %119 : vector<2x64xf32>
    %cst_38 = arith.constant 5.000000e-01 : f32
    %121 = vector.broadcast %cst_38 : f32 to vector<2x64xf32>
    %122 = arith.mulf %121, %120 : vector<2x64xf32>
    %cst_39 = arith.constant 4.471500e-02 : f32
    %123 = vector.broadcast %cst_39 : f32 to vector<2x64xf32>
    %124 = arith.mulf %123, %120 : vector<2x64xf32>
    %125 = arith.mulf %124, %120 : vector<2x64xf32>
    %126 = arith.mulf %125, %120 : vector<2x64xf32>
    %127 = arith.addf %120, %126 : vector<2x64xf32>
    %cst_40 = arith.constant 0.797884583 : f32
    %128 = vector.broadcast %cst_40 : f32 to vector<2x64xf32>
    %129 = arith.mulf %128, %127 : vector<2x64xf32>
    %130 = math.tanh %129 : vector<2x64xf32>
    %cst_41 = arith.constant 1.000000e+00 : f32
    %131 = vector.broadcast %cst_41 : f32 to vector<2x64xf32>
    %132 = arith.addf %131, %130 : vector<2x64xf32>
    %133 = arith.mulf %122, %132 : vector<2x64xf32>
    %c0_42 = arith.constant 0 : index
    %c1152 = arith.constant 1152 : index
    %134 = vector.load %arg1[%c0_42, %c1152] : memref<64x1664xf32, #tpu.memory_space<vmem>>, vector<64x32xf32>
    %cst_43 = arith.constant dense<0.000000e+00> : vector<2x32xf32>
    %135 = tpu.matmul %133, %134, %cst_43 {dimension_numbers = #tpu.dot_dimension_numbers<[1], [0], [0], [1], [0, 0, 1, 1], [], []>} : vector<2x64xf32>, vector<64x32xf32>, vector<2x32xf32> -> vector<2x32xf32>
    %c6 = arith.constant 6 : index
    %c1408_44 = arith.constant 1408 : index
    %136 = vector.load %arg1[%c6, %c1408_44] : memref<64x1664xf32, #tpu.memory_space<vmem>>, vector<1x32xf32>
    %137 = vector.broadcast %136 : vector<1x32xf32> to vector<2x32xf32>
    %138 = arith.addf %135, %137 : vector<2x32xf32>
    %139 = arith.addf %138, %138 : vector<2x32xf32>
    %c10 = arith.constant 10 : index
    %c1408_45 = arith.constant 1408 : index
    %140 = vector.load %arg1[%c10, %c1408_45] : memref<64x1664xf32, #tpu.memory_space<vmem>>, vector<1x32xf32>
    %c11 = arith.constant 11 : index
    %c1408_46 = arith.constant 1408 : index
    %141 = vector.load %arg1[%c11, %c1408_46] : memref<64x1664xf32, #tpu.memory_space<vmem>>, vector<1x32xf32>
    %cst_47 = arith.constant dense<0.000000e+00> : vector<2xf32>
    %142 = vector.multi_reduction <add>, %139, %cst_47 [1] : vector<2x32xf32> to vector<2xf32>
    %143 = vector.shape_cast %142 : vector<2xf32> to vector<2x1xf32>
    %cst_48 = arith.constant 3.200000e+01 : f32
    %144 = vector.broadcast %cst_48 : f32 to vector<2x1xf32>
    %145 = arith.divf %143, %144 : vector<2x1xf32>
    %146 = vector.broadcast %145 : vector<2x1xf32> to vector<2x32xf32>
    %147 = arith.subf %139, %146 : vector<2x32xf32>
    %148 = arith.mulf %147, %147 : vector<2x32xf32>
    %cst_49 = arith.constant dense<0.000000e+00> : vector<2xf32>
    %149 = vector.multi_reduction <add>, %148, %cst_49 [1] : vector<2x32xf32> to vector<2xf32>
    %150 = vector.shape_cast %149 : vector<2xf32> to vector<2x1xf32>
    %cst_50 = arith.constant 3.200000e+01 : f32
    %151 = vector.broadcast %cst_50 : f32 to vector<2x1xf32>
    %152 = arith.divf %150, %151 : vector<2x1xf32>
    %cst_51 = arith.constant 9.99999996E-13 : f32
    %153 = vector.broadcast %cst_51 : f32 to vector<2x1xf32>
    %154 = arith.addf %152, %153 : vector<2x1xf32>
    %155 = math.rsqrt %154 : vector<2x1xf32>
    %156 = vector.broadcast %155 : vector<2x1xf32> to vector<2x32xf32>
    %157 = arith.mulf %147, %156 : vector<2x32xf32>
    %158 = vector.broadcast %140 : vector<1x32xf32> to vector<2x32xf32>
    %159 = arith.mulf %157, %158 : vector<2x32xf32>
    %160 = vector.broadcast %141 : vector<1x32xf32> to vector<2x32xf32>
    %161 = arith.addf %159, %160 : vector<2x32xf32>
    %c0_52 = arith.constant 0 : index
    %c1024 = arith.constant 1024 : index
    %162 = vector.load %arg1[%c0_52, %c1024] : memref<64x1664xf32, #tpu.memory_space<vmem>>, vector<32x70xf32>
    %cst_53 = arith.constant dense<0.000000e+00> : vector<2x70xf32>
    %163 = tpu.matmul %161, %162, %cst_53 {dimension_numbers = #tpu.dot_dimension_numbers<[1], [0], [0], [1], [0, 0, 1, 1], [], []>} : vector<2x32xf32>, vector<32x70xf32>, vector<2x70xf32> -> vector<2x70xf32>
    %c5 = arith.constant 5 : index
    %c1408_54 = arith.constant 1408 : index
    %164 = vector.load %arg1[%c5, %c1408_54] : memref<64x1664xf32, #tpu.memory_space<vmem>>, vector<1x70xf32>
    %165 = vector.broadcast %164 : vector<1x70xf32> to vector<2x70xf32>
    %166 = arith.addf %163, %165 : vector<2x70xf32>
    %167 = vector.extract_strided_slice %166 {offsets = [0, 0], sizes = [2, 64], strides = [1, 1]} : vector<2x70xf32> to vector<2x64xf32>
    %168 = vector.extract_strided_slice %166 {offsets = [0, 64], sizes = [2, 6], strides = [1, 1]} : vector<2x70xf32> to vector<2x6xf32>
    %169 = vector.extract_strided_slice %167 {offsets = [0, 0], sizes = [1, 64], strides = [1, 1]} : vector<2x64xf32> to vector<1x64xf32>
    %170 = vector.shape_cast %169 : vector<1x64xf32> to vector<1x64xf32>
    %171 = vector.broadcast %170 : vector<1x64xf32> to vector<16x64xf32>
    %172 = vector.extract_strided_slice %167 {offsets = [1, 0], sizes = [1, 64], strides = [1, 1]} : vector<2x64xf32> to vector<1x64xf32>
    %173 = vector.shape_cast %172 : vector<1x64xf32> to vector<1x64xf32>
    %174 = vector.broadcast %173 : vector<1x64xf32> to vector<16x64xf32>
    %175 = tpu.concatenate %171, %174 in 0 : vector<16x64xf32>, vector<16x64xf32> -> vector<32x64xf32>
    %176 = arith.addf %175, %6 : vector<32x64xf32>
    %cst_55 = arith.constant 5.000000e-01 : f32
    %177 = vector.broadcast %cst_55 : f32 to vector<32x64xf32>
    %178 = arith.mulf %177, %176 : vector<32x64xf32>
    %cst_56 = arith.constant 4.471500e-02 : f32
    %179 = vector.broadcast %cst_56 : f32 to vector<32x64xf32>
    %180 = arith.mulf %179, %176 : vector<32x64xf32>
    %181 = arith.mulf %180, %176 : vector<32x64xf32>
    %182 = arith.mulf %181, %176 : vector<32x64xf32>
    %183 = arith.addf %176, %182 : vector<32x64xf32>
    %cst_57 = arith.constant 0.797884583 : f32
    %184 = vector.broadcast %cst_57 : f32 to vector<32x64xf32>
    %185 = arith.mulf %184, %183 : vector<32x64xf32>
    %186 = math.tanh %185 : vector<32x64xf32>
    %cst_58 = arith.constant 1.000000e+00 : f32
    %187 = vector.broadcast %cst_58 : f32 to vector<32x64xf32>
    %188 = arith.addf %187, %186 : vector<32x64xf32>
    %189 = arith.mulf %178, %188 : vector<32x64xf32>
    %c0_59 = arith.constant 0 : index
    %c1280 = arith.constant 1280 : index
    %190 = vector.load %arg1[%c0_59, %c1280] : memref<64x1664xf32, #tpu.memory_space<vmem>>, vector<64x32xf32>
    %cst_60 = arith.constant dense<0.000000e+00> : vector<32x32xf32>
    %191 = tpu.matmul %189, %190, %cst_60 {dimension_numbers = #tpu.dot_dimension_numbers<[1], [0], [0], [1], [0, 0, 1, 1], [], []>} : vector<32x64xf32>, vector<64x32xf32>, vector<32x32xf32> -> vector<32x32xf32>
    %c7 = arith.constant 7 : index
    %c1408_61 = arith.constant 1408 : index
    %192 = vector.load %arg1[%c7, %c1408_61] : memref<64x1664xf32, #tpu.memory_space<vmem>>, vector<1x32xf32>
    %193 = vector.broadcast %192 : vector<1x32xf32> to vector<32x32xf32>
    %194 = arith.addf %191, %193 : vector<32x32xf32>
    %195 = arith.addf %194, %194 : vector<32x32xf32>
    %c12 = arith.constant 12 : index
    %c1408_62 = arith.constant 1408 : index
    %196 = vector.load %arg1[%c12, %c1408_62] : memref<64x1664xf32, #tpu.memory_space<vmem>>, vector<1x32xf32>
    %c13 = arith.constant 13 : index
    %c1408_63 = arith.constant 1408 : index
    %197 = vector.load %arg1[%c13, %c1408_63] : memref<64x1664xf32, #tpu.memory_space<vmem>>, vector<1x32xf32>
    %cst_64 = arith.constant dense<0.000000e+00> : vector<32xf32>
    %198 = vector.multi_reduction <add>, %195, %cst_64 [1] : vector<32x32xf32> to vector<32xf32>
    %199 = vector.shape_cast %198 : vector<32xf32> to vector<32x1xf32>
    %cst_65 = arith.constant 3.200000e+01 : f32
    %200 = vector.broadcast %cst_65 : f32 to vector<32x1xf32>
    %201 = arith.divf %199, %200 : vector<32x1xf32>
    %202 = vector.broadcast %201 : vector<32x1xf32> to vector<32x32xf32>
    %203 = arith.subf %195, %202 : vector<32x32xf32>
    %204 = arith.mulf %203, %203 : vector<32x32xf32>
    %cst_66 = arith.constant dense<0.000000e+00> : vector<32xf32>
    %205 = vector.multi_reduction <add>, %204, %cst_66 [1] : vector<32x32xf32> to vector<32xf32>
    %206 = vector.shape_cast %205 : vector<32xf32> to vector<32x1xf32>
    %cst_67 = arith.constant 3.200000e+01 : f32
    %207 = vector.broadcast %cst_67 : f32 to vector<32x1xf32>
    %208 = arith.divf %206, %207 : vector<32x1xf32>
    %cst_68 = arith.constant 9.99999996E-13 : f32
    %209 = vector.broadcast %cst_68 : f32 to vector<32x1xf32>
    %210 = arith.addf %208, %209 : vector<32x1xf32>
    %211 = math.rsqrt %210 : vector<32x1xf32>
    %212 = vector.broadcast %211 : vector<32x1xf32> to vector<32x32xf32>
    %213 = arith.mulf %203, %212 : vector<32x32xf32>
    %214 = vector.broadcast %196 : vector<1x32xf32> to vector<32x32xf32>
    %215 = arith.mulf %213, %214 : vector<32x32xf32>
    %216 = vector.broadcast %197 : vector<1x32xf32> to vector<32x32xf32>
    %217 = arith.addf %215, %216 : vector<32x32xf32>
    %c14 = arith.constant 14 : index
    %c1408_69 = arith.constant 1408 : index
    %218 = vector.load %arg1[%c14, %c1408_69] : memref<64x1664xf32, #tpu.memory_space<vmem>>, vector<1x32xf32>
    %219 = vector.broadcast %218 : vector<1x32xf32> to vector<32x32xf32>
    %220 = arith.mulf %217, %219 : vector<32x32xf32>
    %cst_70 = arith.constant dense<0.000000e+00> : vector<32xf32>
    %221 = vector.multi_reduction <add>, %220, %cst_70 [1] : vector<32x32xf32> to vector<32xf32>
    %222 = vector.shape_cast %221 : vector<32xf32> to vector<32x1xf32>
    %c0_71 = arith.constant 0 : index
    %c1536 = arith.constant 1536 : index
    %223 = vector.load %arg1[%c0_71, %c1536] : memref<64x1664xf32, #tpu.memory_space<vmem>>, vector<32x16xf32>
    %224 = vector.broadcast %222 : vector<32x1xf32> to vector<32x16xf32>
    %225 = arith.mulf %223, %224 : vector<32x16xf32>
    %226 = vector.extract_strided_slice %225 {offsets = [0, 0], sizes = [16, 16], strides = [1, 1]} : vector<32x16xf32> to vector<16x16xf32>
    %cst_72 = arith.constant dense<0.000000e+00> : vector<16xf32>
    %227 = vector.multi_reduction <add>, %226, %cst_72 [0] : vector<16x16xf32> to vector<16xf32>
    %228 = vector.shape_cast %227 : vector<16xf32> to vector<1x16xf32>
    %229 = vector.extract_strided_slice %225 {offsets = [16, 0], sizes = [16, 16], strides = [1, 1]} : vector<32x16xf32> to vector<16x16xf32>
    %cst_73 = arith.constant dense<0.000000e+00> : vector<16xf32>
    %230 = vector.multi_reduction <add>, %229, %cst_73 [0] : vector<16x16xf32> to vector<16xf32>
    %231 = vector.shape_cast %230 : vector<16xf32> to vector<1x16xf32>
    %232 = tpu.concatenate %228, %231 in 0 : vector<1x16xf32>, vector<1x16xf32> -> vector<2x16xf32>
    %c0_74 = arith.constant 0 : index
    %c40 = arith.constant 40 : index
    %233 = vector.load %arg0[%c0_74, %c40] : memref<64x128xf32, #tpu.memory_space<vmem>>, vector<2x16xf32>
    %cst_75 = arith.constant 5.000000e-01 : f32
    %234 = vector.broadcast %cst_75 : f32 to vector<2x16xf32>
    %235 = arith.cmpf ogt, %233, %234 : vector<2x16xf32>
    %cst_76 = arith.constant 0xFF800000 : f32
    %236 = vector.broadcast %cst_76 : f32 to vector<2x16xf32>
    %237 = arith.select %235, %236, %232 : vector<2x16xi1>, vector<2x16xf32>
    %cst_77 = arith.constant 0.000000e+00 : f32
    %238 = vector.broadcast %cst_77 : f32 to vector<2x74xf32>
    %239 = tpu.concatenate %237, %168, %161, %238 in 1 : vector<2x16xf32>, vector<2x6xf32>, vector<2x32xf32>, vector<2x74xf32> -> vector<2x128xf32>
    %c0_78 = arith.constant 0 : index
    %c0_79 = arith.constant 0 : index
    %240 = vector.load %arg2[%c0_78, %c0_79] : memref<2x128xf32, #tpu.memory_space<vmem>>, vector<2x128xf32>
    tpu.vector_store %arg2[%c0_78, %c0_79], %239 {strides = array<i32>} : memref<2x128xf32, #tpu.memory_space<vmem>>, vector<2x128xf32>,
    return
  }
}

</mosaic_0001>

<bundles_post_ra>
// kernel: prediction_forward.1
= control target key start
LH: loop header
LB: loop body
LE: loop exit
PB: predicated region body
PF: predicated region fallthrough
CT: control target
= control target key end

     0   :  { %7 = vsyncpa [#allocation3], 0  ;;  %s1560_s9 = smov [#allocation2]   ;;  %s1806_s0 = inlined_call_operand.vmem [shape: f32[64,128], index: 0, kind: input, shape index: {}]   ;;  %s1807_s1 = inlined_call_operand.hbm [shape: f32[64,1664], index: 1, kind: input, shape index: {}]   ;;  %s1808_s2 = inlined_call_operand.vmem [shape: f32[2,128], index: 2, kind: output, shape index: {}]  }
   0x1   :  { %s15_s10 = sshll.u32 %s1560_s9, 4  ;;  %s1536_s13 = scalar_lea.hbm %s1807_s1, 13312  ;;  %s16_s10 = int_to_ptr.vmem [resolvable:$true] %s15_s10 }
   0x2   :  { %p1537_p0 = scmp.ne.s32.totalorder %s1807_s1, %s1536_s13  ;;  %p1540_p1 = scmp.lt.u32.totalorder %s1536_s13, %s1807_s1 }
   0x4   :  { %p1542_p2 = pnand %p1540_p1, %p1537_p0 }
   0x6   :  { %1545 = shalt.err (!%p1542_p2)
}
   0x7   :  { %s1546_s18 = scalar_lea.vmem %s16_s10, 13312  ;;  %p1551_p4 = scmp.lt.s32.totalorder %s16_s10, %s16_s10 }
   0x8   :  { %p1547_p3 = scmp.ne.s32.totalorder %s16_s10, %s1546_s18  ;;  %p1552_p5 = scmp.lt.s32.totalorder %s1546_s18, %s1546_s18 }
   0xa   :  { %p1553_p6 = por %p1552_p5, %p1551_p4 }
   0xc   :  { %p1554_p7 = pnand %p1553_p6, %p1547_p3 }
   0xe   :  { %1557 = shalt.err (!%p1554_p7)
}
   0xf   :  { %s1561_s19 = smov 1664   ;;  %s1562_s20 = smov 104  }
  0x10   :  { %21 = dma.hbm_to_vmem [thread:$0]  %s1807_s1, 13312, %s16_s10, [#allocation3], %s1561_s19, %s1561_s19, %s1562_s20  }
  0x11   :  { %1558 = dma.done.wait [#allocation3], 13312  }
  0x12   :  { %1559 = vsyncadd [#allocation3], 4294953984  ;;  %v1563_v0 = vmov 0.0   ;;  %v1564_v1 = vmov 32   ;;  %v34_v2 = vld [vmem:[#allocation2 + $0x8] sm:$0xff]  ;;  %v38_v3 = vld [vmem:[#allocation2 + $0x70] sm:$0xff] }
  0x13   :  { %138 = vmatprep.mubr.f32.mxu0 %v1563_v0  ;;  %1500 = vset.pattern.permute.xlu0 %v1564_v1  ;;  %v33_v4 = vld [vmem:[#allocation2] sm:$0xff]  ;;  %v1410_v5 = vpack.c.bf16 %v38_v3, %v34_v2  ;;  %v37_v6 = vld [vmem:[#allocation2 + $0x68] sm:$0xff]  ;;  %v42_v7 = vld [vmem:[#allocation2 + $0xd8] sm:$0xff]  ;;  %v1565_v15 = vmov 0   ;;  %vm49_vm1 = vcmask 261120   ;;  %s1566_s30 = smov 64  }
  0x14   :  { %237 = vmatprep.mubr.f32.mxu1 %v1563_v0  ;;  %1501 = vset.pattern.permute.xlu1 %v1564_v1  ;;  %v46_v8 = vld [vmem:[#allocation2 + $0x140] sm:$0xff]  ;;  %v1412_v9 = vpack.c.bf16 %v37_v6, %v33_v4  ;;  %v41_v11 = vld [vmem:[#allocation2 + $0xd0] sm:$0xff]  ;;  %v45_v12 = vld [vmem:[#allocation2 + $0x138] sm:$0xff]  ;;  %v1567_v40 = vmov 0.0|0.0   ;;  %s1568_s11 = smov 96   ;;  %vm1569_vm4 = vmmov 0  }
  0x15   :  { %v1414_v10 = vpack.c.bf16 %v46_v8, %v42_v7  ;;  %1411 = vmatprep.subr.bf16.mxu0 %v1410_v5  ;;  %v1606_v13 = vld [vmem:[%s1806_s0] sm:$0x3]  ;;  %v1416_v14 = vpack.c.bf16 %v45_v12, %v41_v11  ;;  %v1623_v18 = vld [vmem:[%s1806_s0 + $0x8] sm:$0xff]  ;;  %v1631_v19 = vld [vmem:[%s1806_s0 + $0x10] sm:$0xff]  ;;  %vm543_vm8 = vcmask 1040384   ;;  %vm651_vm9 = vcmask 254976  }
  0x16   :  { %1413 = vmatpush1.bf16.msra.mxu0 %v1412_v9  ;;  %vm280_vm0 = vcmp.gt.f32.partialorder %v1606_v13, 0.5  ;;  %v1615_v17 = vld [vmem:[%s1806_s0] sm:$0xff]  ;;  %v277_v24 = vld [vmem:[#allocation2 + $0x58] ss:$0 sm:$0xff]  ;;  %vm485_vm2 = vcmp.gt.f32.partialorder %v1631_v19, 0.5  ;;  %v304_v38 = vld [vmem:[#allocation2 + $0x88] sm:$0xff] }
  0x17   :  { %1415 = vmatprep.subr.bf16.mxu0 %v1414_v10  ;;  %v281_v16 = vsel %vm280_vm0, 1, %v1565_v15  ;;  %v487_v27 = vsel %vm485_vm2, 1, %v1565_v15  ;;  %v303_v37 = vld [vmem:[#allocation2 + $0x20] sm:$0xff]  ;;  %v1645_v39 = vld [vmem:[%s1806_s0 + $0x18] sm:$0xff]  ;;  %v35_v46 = vld [vmem:[#allocation2 + $0x10] sm:$0xff]  ;;  %vm778_vm10 = vcmask 523264  }
  0x18   :  { %283 = vperm.xlu0 %1500, %v281_v16   ;;  %v1427_v41 = vpack.c.bf16 %v304_v38, %v303_v37  ;;  %v36_v42 = vld [vmem:[#allocation2 + $0x18] sm:$0xff]  ;;  %v40_v43 = vld [vmem:[#allocation2 + $0x80] sm:$0xff]  ;;  %v305_v48 = vld [vmem:[#allocation2 + $0xf0] sm:$0xff]  ;;  %vm486_vm5 = vcmp.gt.f32.partialorder %v1645_v39, 0.5  ;;  %vm1193_vm11 = vcmask 130048   ;;  %s1571_s14 = smov 80  }
  0x19   :  { %v29_v44 = vld [vmem:[%s1806_s0 + $0x20] sm:$0xff]  ;;  %v1418_v45 = vpack.c.bf16 %v40_v43, %v36_v42  ;;  %v39_v47 = vld [vmem:[#allocation2 + $0x78] sm:$0xff]  ;;  %v44_v51 = vld [vmem:[#allocation2 + $0xe8] sm:$0xff]  ;;  %v488_v2 = vsel %vm486_vm5, 1, %v1565_v15  ;;  %s1572_s15 = smov 22   ;;  %s1573_s16 = smov 88  }
  0x1a   :  { %1417 = vmatpush1.bf16.msra.mxu0 %v1416_v14  ;;  %v1420_v49 = vpack.c.bf16 %v39_v47, %v35_v46  ;;  %v306_v50 = vld [vmem:[#allocation2 + $0x158] sm:$0xff]  ;;  %v48_v52 = vld [vmem:[#allocation2 + $0x150] sm:$0xff]  ;;  %v43_v55 = vld [vmem:[#allocation2 + $0xe0] sm:$0xff]  ;;  %vm1230_vm12 = vcmask 179200   ;;  %vm1232_vm13 = vcmask 441344  }
  0x1b   :  { %1426 = vmatprep.subr.bf16.mxu0 %v1567_v40  ;;  %1419 = vmatprep.subr.bf16.mxu1 %v1418_v45  ;;  %v1430_v53 = vpack.c.bf16 %v306_v50, %v305_v48  ;;  %v1422_v54 = vpack.c.bf16 %v48_v52, %v44_v51  ;;  %v47_v56 = vld [vmem:[#allocation2 + $0x148] sm:$0xff]  ;;  %v31_v60 = vld [vmem:[%s1806_s0 + $0x30] sm:$0xff]  ;;  %v32_v61 = vld [vmem:[%s1806_s0 + $0x38] sm:$0xff] }
  0x1c   :  { %1421 = vmatpush1.bf16.msra.mxu1 %v1420_v49  ;;  %v1424_v57 = vpack.c.bf16 %v47_v56, %v43_v55  ;;  %v30_v58 = vld [vmem:[%s1806_s0 + $0x28] sm:$0xff]  ;;  %v562_v46 = vld [vmem:[#allocation2 + $0x30] sm:$0xff]  ;;  %v563_v47 = vld [vmem:[#allocation2 + $0x98] sm:$0xff]  ;;  %s1570_s0 = smov 40  }
  0x1d   :  { %1240 = vmatmul.mubr.msk.f32.vlgmr.msra.gmra.mrb[0].mxu0 %vm49_vm1, %v1615_v17  ;;  %1423 = vmatprep.subr.bf16.mxu1 %v1422_v54  ;;  %v564_v48 = vld [vmem:[#allocation2 + $0x100] sm:$0xff]  ;;  %v1441_v49 = vpack.c.bf16 %v563_v47, %v562_v46  ;;  %v565_v50 = vld [vmem:[#allocation2 + $0x168] sm:$0xff] }
  0x1e   :  { %143 = vmatprep.mubr.f32.mxu0 %v1563_v0  ;;  %1428 = vmatpush3.bf16.msra.mxu0 %v1427_v41  ;;  %v1444_v51 = vpack.c.bf16 %v565_v50, %v564_v48 }
  0x1f   :  { %1429 = vmatprep.subr.bf16.mxu0 %v1567_v40 }
  0x20   :  { %1425 = vmatpush1.bf16.msra.mxu1 %v1424_v57 }
  0x21   :  { %1241 = vmatmul.mubr.msk.f32.gmra.mrb[2].mxu0 %vm49_vm1, %v1623_v18  ;;  %1446 = vmatprep.subr.bf16.mxu1 %v1567_v40 }
  0x22   :  { %148 = vmatprep.mubr.f32.mxu0 %v1563_v0  ;;  %1431 = vmatpush3.bf16.msra.mxu0 %v1430_v53 }
  0x23   :  { %1248 = vmatmul.mubr.msk.f32.vlgmr.msra.gmra.mrb[0].mxu1 %vm49_vm1, %v1615_v17 }
  0x24   :  { %241 = vmatprep.mubr.f32.mxu1 %v1563_v0 }
  0x25   :  { %1242 = vmatmul.mubr.msk.f32.gmra.mrb[4].mxu0 %vm49_vm1, %v1631_v19 }
  0x26   :  { %152 = vmatprep.mubr.f32.mxu0 %v1563_v0 }
  0x27   :  { %1249 = vmatmul.mubr.msk.f32.gmra.mrb[2].mxu1 %vm49_vm1, %v1623_v18 }
  0x28   :  { %245 = vmatprep.mubr.f32.mxu1 %v1563_v0 }
  0x29   :  { %1243 = vmatmul.mubr.msk.f32.gmra.mrb[6].mxu0 %vm49_vm1, %v1645_v39 }
  0x2a   :  { %156 = vmatprep.mubr.f32.mxu0 %v1563_v0 }
  0x2b   :  { %1250 = vmatmul.mubr.msk.f32.gmra.mrb[4].mxu1 %vm49_vm1, %v1631_v19  ;;  %v383_v19 = vld [vmem:[#allocation2 + $0x5a] ss:$0 sm:$0xff] }
  0x2c   :  { %250 = vmatprep.mubr.f32.mxu1 %v1563_v0 }
  0x2d   :  { %1244 = vmatmul.mubr.msk.f32.gmra.mrb[8].mxu0 %vm49_vm1, %v29_v44 }
  0x2e   :  { %160 = vmatprep.mubr.f32.mxu0 %v1563_v0 }
  0x2f   :  { %1251 = vmatmul.mubr.msk.f32.gmra.mrb[6].mxu1 %vm49_vm1, %v1645_v39 }
  0x30   :  { %255 = vmatprep.mubr.f32.mxu1 %v1563_v0 }
  0x31   :  { %1245 = vmatmul.mubr.msk.f32.gmra.mrb[10].mxu0 %vm49_vm1, %v30_v58 }
  0x32   :  { %164 = vmatprep.mubr.f32.mxu0 %v1563_v0 }
  0x33   :  { %1252 = vmatmul.mubr.msk.f32.gmra.mrb[8].mxu1 %vm49_vm1, %v29_v44 }
  0x34   :  { %260 = vmatprep.mubr.f32.mxu1 %v1563_v0 }
  0x35   :  { %1246 = vmatmul.mubr.msk.f32.gmra.mrb[12].mxu0 %vm49_vm1, %v31_v60 }
  0x36   :  { %168 = vmatprep.mubr.f32.mxu0 %v1563_v0 }
  0x37   :  { %1253 = vmatmul.mubr.msk.f32.gmra.mrb[10].mxu1 %vm49_vm1, %v30_v58 }
  0x38   :  { %265 = vmatprep.mubr.f32.mxu1 %v1563_v0 }
  0x39   :  { %1247 = vmatmul.mubr.msk.f32.gmra.mrb[14].mxu0 %vm49_vm1, %v32_v61 }
  0x3a   :  { %1322 = vmatprep.mubr.msk.f32.mxu0 %vm1569_vm4, %v1563_v0 }
  0x3b   :  { %1254 = vmatmul.mubr.msk.f32.gmra.mrb[12].mxu1 %vm49_vm1, %v31_v60 }
  0x3c   :  { %270 = vmatprep.mubr.f32.mxu1 %v1563_v0 }
  0x3f   :  { %1255 = vmatmul.mubr.msk.f32.gmra.mrb[14].mxu1 %vm49_vm1, %v32_v61 }
  0x40   :  { %1355 = vmatprep.mubr.msk.f32.mxu1 %vm1569_vm4, %v1563_v0 }
  0x97   :  { %v284_v30 = vpop.permute.xlu0 %283 }
  0x98   :  { %vm285_vm3 = vcmp.eq.s32.totalorder %v284_v30, 1 }
  0xf0   :  { %v140_v20 = vpop.f32.mrb[0].mxu0 }
  0xf1   :  { %v142_v21 = vpop.f32.mrb[1].mxu0 }
  0xf4   :  { %v145_v22 = vpop.f32.mrb[2].mxu0 }
  0xf5   :  { %v146_v23 = vpop.f32.mrb[3].mxu0 }
  0xf6   :  { %v276_v25 = vadd.f32 %v146_v23, %v140_v20  ;;  %v239_v9 = vpop.f32.mrb[0].mxu1  ;;  %v396_v23 = vld [vmem:[#allocation2 + $0x28] sm:$0xff] }
  0xf7   :  { %v240_v11 = vpop.f32.mrb[1].mxu1 }
  0xf8   :  { %v278_v26 = vadd.f32 %v277_v24, %v276_v25  ;;  %v150_v28 = vpop.f32.mrb[4].mxu0  ;;  %v397_v24 = vld [vmem:[#allocation2 + $0x90] sm:$0xff] }
  0xf9   :  { %v151_v29 = vpop.f32.mrb[5].mxu0  ;;  %v1432_v25 = vpack.c.bf16 %v397_v24, %v396_v23 }
  0xfa   :  { %287 = vrot.lane.b32.xlu0 %v278_v26, %s1566_s30  ;;  %v243_v14 = vpop.f32.mrb[2].mxu1 }
  0xfb   :  { %v244_v17 = vpop.f32.mrb[3].mxu1  ;;  %1433 = vmatprep.subr.bf16.mxu0 %v1432_v25 }
  0xfc   :  { %v154_v3 = vpop.f32.mrb[6].mxu0 }
  0xfd   :  { %v155_v4 = vpop.f32.mrb[7].mxu0 }
  0xfe   :  { %490 = vperm.xlu0 %1500, %v487_v27   ;;  %v247_v20 = vpop.f32.mrb[4].mxu1  ;;  %v399_v27 = vld [vmem:[#allocation2 + $0x160] sm:$0xff] }
  0xff   :  { %v384_v21 = vadd.f32 %v383_v19, %v247_v20  ;;  %v249_v22 = vpop.f32.mrb[5].mxu1 }
 0x100   :  { %v158_v5 = vpop.f32.mrb[8].mxu0 }
 0x101   :  { %v159_v6 = vpop.f32.mrb[9].mxu0 }
 0x102   :  { %521 = vrot.lane.b32.xlu0 %v384_v21, %s1568_s11  ;;  %v252_v28 = vpop.f32.mrb[6].mxu1 }
 0x103   :  { %v385_v30 = vadd.f32 %v383_v19, %v252_v28 }
 0x104   :  { %v162_v7 = vpop.f32.mrb[10].mxu0 }
 0x105   :  { %v163_v8 = vpop.f32.mrb[11].mxu0 }
 0x108   :  { %v166_v10 = vpop.f32.mrb[12].mxu0 }
 0x109   :  { %v167_v12 = vpop.f32.mrb[13].mxu0 }
 0x10c   :  { %v170_v16 = vpop.f32.mrb[14].mxu0 }
 0x10d   :  { %v171_v18 = vpop.f32.mrb[15].mxu0 }
 0x16c   :  { %v288_v31 = vpop.permute.xlu0 %287 }
 0x16d   :  { %v1639_v32 = vsel %vm285_vm3, %v278_v26, %v288_v31  ;;  %v398_v26 = vld [vmem:[#allocation2 + $0xf8] sm:$0xff]  ;;  %v254_v31 = vpop.f32.mrb[7].mxu1 }
 0x16e   :  { %v292_v33 = vsub.f32 0.0, %v1639_v32  ;;  %v1436_v29 = vpack.c.bf16 %v399_v27, %v398_v26 }
 0x170   :  { %v293_v34 = vmul.f32 1.442695, %v292_v33  ;;  %v386_v33 = vlaneseq }
 0x172   :  { %1502 = vpow2.f32 %v293_v34  ;;  %v1707_v34 = vshrl.u32 %v386_v33, 7 }
 0x174   :  { %v392_v37 = vsub.s32 1, %v1707_v34 }
 0x17c   :  { %v1503_v35 = vpop.eup %1502 }
 0x17d   :  { %v295_v36 = vadd.f32 1.0, %v1503_v35  ;;  %v307_v35 = vld [vmem:[#allocation2 + $0x59] ss:$0 sm:$0xff]  ;;  %v491_v53 = vpop.permute.xlu0 %490 }
 0x17e   :  { %vm495_vm7 = vcmp.eq.s32.totalorder %v491_v53, 1 }
 0x17f   :  { %1504 = vrcp.f32 %v295_v36  ;;  %v388_v36 = vsub.s32 0, %v1707_v34 }
 0x180   :  { %1506 = vtanh.f32 %v1639_v32  ;;  %v257_v32 = vpop.f32.mrb[8].mxu1 }
 0x189   :  { %v1505_v59 = vpop.eup %1504 }
 0x18a   :  { %299 = vrot.lane.b32.xlu1 %v1505_v59, %s1568_s11  ;;  %v1507_v62 = vpop.eup %1506 }
 0x1fc   :  { %v300_v63 = vpop.permute.xlu1 %299 }
 0x1fd   :  { %v1697_v1 = vmul.f32 %v1507_v62, %v300_v63 }
 0x1ff   :  { %309 = vrot.lane.b32.xlu1 %v1697_v1, %s1566_s30 }
 0x203   :  { %493 = vperm.xlu1 %1501, %v488_v2  }
 0x207   :  { %523 = vrot.lane.b32.xlu1 %v385_v30, %s1568_s11 }
 0x271   :  { %v310_v15 = vpop.permute.xlu1 %309 }
 0x272   :  { %1323 = vmatmul.mubr.msk.f32.vlgmr.msra.gmra.mrb[16].mxu0 %vm49_vm1, %v310_v15 }
 0x273   :  { %1435 = vmatpush3.bf16.msra.mxu0 %v1432_v25 }
 0x274   :  { %1437 = vmatprep.subr.bf16.mxu0 %v1436_v29 }
 0x277   :  { %1439 = vmatpush3.bf16.msra.mxu0 %v1436_v29 }
 0x278   :  { %1440 = vmatprep.subr.bf16.mxu0 %v1567_v40 }
 0x282   :  { %v494_v52 = vpop.permute.xlu1 %493 }
 0x283   :  { %vm496_vm6 = vcmp.eq.s32.totalorder %v494_v52, 1 }
 0x286   :  { %v524_v19 = vpop.permute.xlu1 %523 }
 0x345   :  { %v379_v38 = vpop.f32.mrb[16].mxu0 }
 0x346   :  { %v380_v39 = vadd.f32 %v379_v38, %v307_v35  ;;  %v1324_v41 = vpop.f32.mrb[17].mxu0 }
 0x348   :  { %v389_v42 = vrot.slane %v380_v39, %v388_v36  ;;  %v393_v43 = vrot.slane %v380_v39, %v392_v37 }
 0x34a   :  { %v394_v44 = vmul.f32 %v389_v42, %v384_v21  ;;  %v395_v45 = vmul.f32 %v393_v43, %v385_v30  ;;  %v522_v21 = vpop.permute.xlu0 %521 }
 0x34c   :  { %1333 = vmatprep.mubr.msk.f32.mxu0 %vm49_vm1, %v394_v44 }
 0x34d   :  { %1334 = vmatmul.mubr.msk.f32.vlgmr.msra.gmra.mrb[18].mxu0 %vm49_vm1, %v395_v45 }
 0x34e   :  { %1344 = vmatprep.mubr.msk.f32.mxu0 %vm1569_vm4, %v1563_v0  ;;  %1442 = vmatpush3.bf16.msra.mxu0 %v1441_v49 }
 0x34f   :  { %1443 = vmatprep.subr.bf16.mxu0 %v1567_v40 }
 0x352   :  { %1445 = vmatpush3.bf16.msra.mxu0 %v1444_v51 }
 0x353   :  { %1452 = vmatprep.subr.bf16.mxu0 %v1567_v40 }
 0x420   :  { %v1335_v54 = vpop.f32.mrb[18].mxu0 }
 0x421   :  { %v482_v55 = vmul.f32 0.35355338, %v1335_v54  ;;  %v472_v56 = vpop.f32.mrb[19].mxu0 }
 0x422   :  { %v481_v57 = vmul.f32 0.35355338, %v472_v56 }
 0x423   :  { %v498_v58 = vsel %vm496_vm6, -1e+09, %v482_v55 }
 0x424   :  { %v506_v59 = vsel %vm49_vm1, %v498_v58, -inf  ;;  %v497_v60 = vsel %vm495_vm7, -1e+09, %v481_v57 }
 0x425   :  { %v507_v61 = vrot.slane %v506_v59, 4  ;;  %v499_v62 = vsel %vm49_vm1, %v497_v60, -inf }
 0x426   :  { %v500_v63 = vrot.slane %v499_v62, 4 }
 0x427   :  { %v508_v2 = vmax.f32 %v506_v59, %v507_v61  ;;  %v566_v59 = vld [vmem:[#allocation2 + $0x5b] ss:$0 sm:$0xff] }
 0x428   :  { %v501_v3 = vmax.f32 %v499_v62, %v500_v63 }
 0x429   :  { %v509_v4 = vrot.slane %v508_v2, 2 }
 0x42a   :  { %v502_v5 = vrot.slane %v501_v3, 2 }
 0x42b   :  { %v510_v6 = vmax.f32 %v508_v2, %v509_v4 }
 0x42c   :  { %v503_v7 = vmax.f32 %v501_v3, %v502_v5  ;;  %v645_v5 = vld [vmem:[#allocation2 + $0xc0] ss:$0 sm:$0xff] }
 0x42d   :  { %v511_v8 = vrot.slane %v510_v6, 1 }
 0x42e   :  { %v504_v9 = vrot.slane %v503_v7, 1 }
 0x42f   :  { %v512_v10 = vmax.f32 %v510_v6, %v511_v8 }
 0x430   :  { %v505_v11 = vmax.f32 %v503_v7, %v504_v9 }
 0x431   :  { %v514_v12 = vsub.f32 %v498_v58, %v512_v10 }
 0x432   :  { %v513_v14 = vsub.f32 %v497_v60, %v505_v11 }
 0x433   :  { %v517_v16 = vmul.f32 1.442695, %v514_v12  ;;  %v680_v12 = vld [vmem:[#allocation2 + $0x38] sm:$0xff] }
 0x434   :  { %v515_v17 = vmul.f32 1.442695, %v513_v14  ;;  %v681_v14 = vld [vmem:[#allocation2 + $0xa0] sm:$0xff] }
 0x435   :  { %1508 = vpow2.f32 %v517_v16  ;;  %v682_v16 = vld [vmem:[#allocation2 + $0x108] sm:$0xff] }
 0x436   :  { %1510 = vpow2.f32 %v515_v17  ;;  %v1447_v17 = vpack.c.bf16 %v681_v14, %v680_v12  ;;  %v870_v12 = vld [vmem:[#allocation2 + $0x40] sm:$0xff]  ;;  %v871_v14 = vld [vmem:[#allocation2 + $0xa8] sm:$0xff] }
 0x438   :  { %1448 = vmatpush3.bf16.msra.mxu1 %v1447_v17  ;;  %v872_v17 = vld [vmem:[#allocation2 + $0x110] sm:$0xff] }
 0x439   :  { %1449 = vmatprep.subr.bf16.mxu1 %v1567_v40 }
 0x43f   :  { %v1509_v18 = vpop.eup %1508 }
 0x440   :  { %v1511_v20 = vpop.eup %1510  ;;  %v528_v22 = vmul.f32 %v1509_v18, %v524_v19  ;;  %v552_v15 = vsel %vm49_vm1, %v1509_v18, 0.0  ;;  %v683_v18 = vld [vmem:[#allocation2 + $0x170] sm:$0xff] }
 0x441   :  { %v553_v23 = vrot.slane %v552_v15, 4  ;;  %v527_v24 = vmul.f32 %v1511_v20, %v522_v21  ;;  %v545_v25 = vsel %vm49_vm1, %v1511_v20, 0.0  ;;  %v1450_v19 = vpack.c.bf16 %v683_v18, %v682_v16  ;;  %v873_v18 = vld [vmem:[#allocation2 + $0x178] sm:$0xff] }
 0x442   :  { %v536_v26 = vsel %vm49_vm1, %v528_v22, 0.0  ;;  %v546_v27 = vrot.slane %v545_v25, 4  ;;  %v1465_v16 = vpack.c.bf16 %v871_v14, %v870_v12 }
 0x443   :  { %v537_v28 = vrot.slane %v536_v26, 4  ;;  %v554_v29 = vadd.f32 %v553_v23, %v552_v15  ;;  %v529_v30 = vsel %vm49_vm1, %v527_v24, 0.0  ;;  %1451 = vmatpush3.bf16.msra.mxu1 %v1450_v19  ;;  %v1742_v15 = vpop.f32.mrb[9].mxu1  ;;  %v1468_v19 = vpack.c.bf16 %v873_v18, %v872_v17 }
 0x444   :  { %v530_v31 = vrot.slane %v529_v30, 4  ;;  %v547_v32 = vadd.f32 %v546_v27, %v545_v25  ;;  %1464 = vmatprep.subr.bf16.mxu1 %v1567_v40  ;;  %v262_v23 = vpop.f32.mrb[10].mxu1 }
 0x445   :  { %v538_v33 = vadd.f32 %v537_v28, %v536_v26  ;;  %v555_v35 = vrot.slane %v554_v29, 2  ;;  %v1744_v24 = vpop.f32.mrb[11].mxu1 }
 0x446   :  { %v531_v38 = vadd.f32 %v530_v31, %v529_v30  ;;  %v548_v39 = vrot.slane %v547_v32, 2  ;;  %v267_v25 = vpop.f32.mrb[12].mxu1 }
 0x447   :  { %v539_v41 = vrot.slane %v538_v33, 2  ;;  %v556_v42 = vadd.f32 %v555_v35, %v554_v29  ;;  %v1746_v26 = vpop.f32.mrb[13].mxu1  ;;  %v853_v25 = vld [vmem:[#allocation2 + $0xc2] ss:$0 sm:$0xff] }
 0x448   :  { %v532_v43 = vrot.slane %v531_v38, 2  ;;  %v549_v44 = vadd.f32 %v548_v39, %v547_v32  ;;  %v272_v27 = vpop.f32.mrb[14].mxu1  ;;  %v769_v39 = vld [vmem:[#allocation2 + $0x48] sm:$0xff] }
 0x449   :  { %v557_v45 = vrot.slane %v556_v42, 1  ;;  %v540_v46 = vadd.f32 %v539_v41, %v538_v33  ;;  %v1748_v30 = vpop.f32.mrb[15].mxu1  ;;  %v770_v41 = vld [vmem:[#allocation2 + $0xb0] sm:$0xff] }
 0x44a   :  { %v550_v47 = vrot.slane %v549_v44, 1  ;;  %v533_v48 = vadd.f32 %v532_v43, %v531_v38  ;;  %v771_v43 = vld [vmem:[#allocation2 + $0x118] sm:$0xff] }
 0x44b   :  { %v558_v49 = vadd.f32 %v557_v45, %v556_v42  ;;  %v541_v50 = vrot.slane %v540_v46, 1  ;;  %v1453_v42 = vpack.c.bf16 %v770_v41, %v769_v39  ;;  %v1000_v41 = vld [vmem:[#allocation2 + $0x1f0] sm:$0xff] }
 0x44c   :  { %v551_v51 = vadd.f32 %v550_v47, %v549_v44  ;;  %v534_v52 = vrot.slane %v533_v48, 1  ;;  %v772_v44 = vld [vmem:[#allocation2 + $0x180] sm:$0xff]  ;;  %v774_v47 = vld [vmem:[#allocation2 + $0x250] sm:$0xff] }
 0x44d   :  { %v542_v53 = vadd.f32 %v541_v50, %v540_v46  ;;  %v1456_v45 = vpack.c.bf16 %v772_v44, %v771_v43  ;;  %v773_v46 = vld [vmem:[#allocation2 + $0x1e8] sm:$0xff]  ;;  %v776_v50 = vld [vmem:[#allocation2 + $0x320] sm:$0xff] }
 0x44e   :  { %v535_v54 = vadd.f32 %v534_v52, %v533_v48  ;;  %v559_v55 = vsel %vm543_vm8, %v551_v51, %v558_v49  ;;  %v1459_v48 = vpack.c.bf16 %v774_v47, %v773_v46  ;;  %v775_v49 = vld [vmem:[#allocation2 + $0x2b8] sm:$0xff]  ;;  %v1002_v44 = vld [vmem:[#allocation2 + $0x2c0] sm:$0xff] }
 0x44f   :  { %1512 = vrcp.f32 %v559_v55  ;;  %v1462_v51 = vpack.c.bf16 %v776_v50, %v775_v49  ;;  %v874_v47 = vld [vmem:[#allocation2 + $0x5d] ss:$0 sm:$0xff] }
 0x450   :  { %v544_v56 = vsel %vm543_vm8, %v535_v54, %v542_v53 }
 0x459   :  { %v1513_v57 = vpop.eup %1512 }
 0x45a   :  { %v561_v58 = vmul.f32 %v1513_v57, %v544_v56 }
 0x45c   :  { %1345 = vmatmul.mubr.msk.f32.vlgmr.msra.gmra.mrb[20].mxu0 %vm49_vm1, %v561_v58 }
 0x45d   :  { %1374 = vmatprep.mubr.msk.f32.mxu0 %vm1569_vm4, %v1563_v0  ;;  %1454 = vmatpush3.bf16.msra.mxu0 %v1453_v42  ;;  %v1001_v42 = vld [vmem:[#allocation2 + $0x258] sm:$0xff] }
 0x45e   :  { %1455 = vmatprep.subr.bf16.mxu0 %v1567_v40  ;;  %v1478_v43 = vpack.c.bf16 %v1001_v42, %v1000_v41 }
 0x461   :  { %1457 = vmatpush3.bf16.msra.mxu0 %v1456_v45  ;;  %v1003_v45 = vld [vmem:[#allocation2 + $0x328] sm:$0xff] }
 0x462   :  { %1458 = vmatprep.subr.bf16.mxu0 %v1567_v40  ;;  %v1482_v46 = vpack.c.bf16 %v1003_v45, %v1002_v44 }
 0x465   :  { %1460 = vmatpush3.bf16.msra.mxu0 %v1459_v48 }
 0x466   :  { %1461 = vmatprep.subr.bf16.mxu0 %v1567_v40 }
 0x469   :  { %1463 = vmatpush3.bf16.msra.mxu0 %v1462_v51 }
 0x52f   :  { %v636_v60 = vpop.f32.mrb[20].mxu0 }
 0x530   :  { %v637_v61 = vadd.f32 %v636_v60, %v566_v59  ;;  %v1346_v62 = vpop.f32.mrb[21].mxu0 }
 0x532   :  { %641 = vrot.lane.b32.xlu0 %v637_v61, %s1566_s30 }
 0x5a4   :  { %v642_v63 = vpop.permute.xlu0 %641 }
 0x5a5   :  { %v644_v2 = vadd.f32 %v642_v63, %v1697_v1  ;;  %v646_v1 = vld [vmem:[#allocation2 + $0xc1] ss:$0 sm:$0xff] }
 0x5a7   :  { %648 = vrot.lane.b32.xlu1 %v644_v2, %s1566_s30 }
 0x619   :  { %v649_v3 = vpop.permute.xlu1 %648 }
 0x61a   :  { %v652_v4 = vsel %vm651_vm9, %v649_v3, 0.0 }
 0x61b   :  { %653 = vadd.xlane.f32.xlu0 %v652_v4 }
 0x631   :  { %671 = vrot.lane.b32.xlu0 %v645_v5, %s1566_s30 }
 0x6a8   :  { %v654_v6 = vpop.xlane.xlu0 %653 }
 0x6a9   :  { %v656_v7 = vmul.f32 0.03125, %v654_v6 }
 0x6ab   :  { %v657_v8 = vsub.f32 %v644_v2, %v656_v7  ;;  %v777_v2 = vld [vmem:[#allocation2 + $0x5e] ss:$0 sm:$0xff] }
 0x6ac   :  { %v672_v29 = vpop.permute.xlu0 %671 }
 0x6ad   :  { %v658_v9 = vmul.f32 %v657_v8, %v657_v8 }
 0x6af   :  { %660 = vrot.lane.b32.xlu1 %v658_v9, %s1566_s30 }
 0x721   :  { %v661_v10 = vpop.permute.xlu1 %660 }
 0x722   :  { %v663_v11 = vsel %vm651_vm9, %v661_v10, 0.0 }
 0x723   :  { %664 = vadd.xlane.f32.xlu1 %v663_v11 }
 0x734   :  { %676 = vrot.lane.b32.xlu1 %v646_v1, %s1566_s30 }
 0x7b0   :  { %v665_v20 = vpop.xlane.xlu1 %664 }
 0x7b1   :  { %v666_v21 = vmul.f32 0.03125, %v665_v20 }
 0x7b3   :  { %v667_v22 = vadd.f32 1e-12, %v666_v21 }
 0x7b4   :  { %v677_v32 = vpop.permute.xlu1 %676 }
 0x7b5   :  { %1514 = vrsqrt.f32 %v667_v22 }
 0x7bf   :  { %v1515_v28 = vpop.eup %1514 }
 0x7c0   :  { %v669_v31 = vmul.f32 %v1515_v28, %v657_v8  ;;  %v854_v28 = vld [vmem:[#allocation2 + $0xc3] ss:$0 sm:$0xff] }
 0x7c2   :  { %v674_v33 = vmul.f32 %v672_v29, %v669_v31 }
 0x7c4   :  { %v679_v35 = vadd.f32 %v677_v32, %v674_v33  ;;  %v996_v32 = vld [vmem:[#allocation2 + $0x50] sm:$0xff]  ;;  %v998_v33 = vld [vmem:[#allocation2 + $0x120] sm:$0xff] }
 0x7c6   :  { %686 = vrot.lane.b32.xlu0 %v679_v35, %s1566_s30 }
 0x838   :  { %v687_v38 = vpop.permute.xlu0 %686 }
 0x839   :  { %1356 = vmatmul.mubr.msk.f32.vlgmr.msra.gmra.mrb[16].mxu1 %vm49_vm1, %v687_v38  ;;  %v999_v38 = vld [vmem:[#allocation2 + $0x188] sm:$0xff] }
 0x83a   :  { %1385 = vmatprep.mubr.msk.f32.mxu1 %vm1569_vm4, %v1563_v0  ;;  %v684_v0 = vld [vmem:[#allocation2 + $0x5c] ss:$0 sm:$0xff]  ;;  %1466 = vmatpush3.bf16.msra.mxu1 %v1465_v16  ;;  %v1474_v39 = vpack.c.bf16 %v999_v38, %v998_v33 }
 0x83b   :  { %1467 = vmatprep.subr.bf16.mxu1 %v1567_v40  ;;  %v997_v40 = vld [vmem:[#allocation2 + $0xb8] sm:$0xff] }
 0x83c   :  { %v1470_v35 = vpack.c.bf16 %v997_v40, %v996_v32 }
 0x83e   :  { %1469 = vmatpush3.bf16.msra.mxu1 %v1468_v19 }
 0x83f   :  { %1471 = vmatprep.subr.bf16.mxu1 %v1470_v35 }
 0x90c   :  { %v756_v52 = vpop.f32.mrb[16].mxu1 }
 0x90d   :  { %v757_v53 = vadd.f32 %v756_v52, %v684_v0  ;;  %v1357_v54 = vpop.f32.mrb[17].mxu1 }
 0x90f   :  { %v761_v55 = vmul.f32 0.044715, %v757_v53  ;;  %v760_v61 = vmul.f32 0.5, %v757_v53 }
 0x911   :  { %v762_v56 = vmul.f32 %v761_v55, %v757_v53 }
 0x913   :  { %v763_v57 = vmul.f32 %v762_v56, %v757_v53 }
 0x915   :  { %v764_v58 = vadd.f32 %v763_v57, %v757_v53 }
 0x917   :  { %v765_v59 = vmul.f32 0.7978846, %v764_v58 }
 0x919   :  { %1516 = vtanh.f32 %v765_v59 }
 0x923   :  { %v1517_v60 = vpop.eup %1516 }
 0x924   :  { %v767_v62 = vadd.f32 1.0, %v1517_v60 }
 0x926   :  { %v768_v63 = vmul.f32 %v767_v62, %v760_v61 }
 0x928   :  { %1375 = vmatmul.mubr.msk.f32.vlgmr.msra.gmra.mrb[22].mxu0 %vm778_vm10, %v768_v63 }
 0x9fb   :  { %v848_v3 = vpop.f32.mrb[22].mxu0 }
 0x9fc   :  { %v849_v4 = vadd.f32 %v848_v3, %v777_v2  ;;  %v1376_v5 = vpop.f32.mrb[23].mxu0 }
 0x9fe   :  { %v852_v6 = vadd.f32 %v849_v4, %v849_v4 }
 0xa00   :  { %v855_v7 = vsel %vm651_vm9, %v852_v6, 0.0 }
 0xa01   :  { %856 = vadd.xlane.f32.xlu0 %v855_v7 }
 0xa8e   :  { %v857_v8 = vpop.xlane.xlu0 %856 }
 0xa8f   :  { %v858_v9 = vmul.f32 0.03125, %v857_v8 }
 0xa91   :  { %v859_v10 = vsub.f32 %v852_v6, %v858_v9 }
 0xa93   :  { %v860_v11 = vmul.f32 %v859_v10, %v859_v10 }
 0xa95   :  { %v861_v1 = vsel %vm651_vm9, %v860_v11, 0.0 }
 0xa96   :  { %862 = vadd.xlane.f32.xlu1 %v861_v1 }
 0xb23   :  { %v863_v20 = vpop.xlane.xlu1 %862 }
 0xb24   :  { %v864_v21 = vmul.f32 0.03125, %v863_v20 }
 0xb26   :  { %v865_v22 = vadd.f32 1e-12, %v864_v21 }
 0xb28   :  { %1518 = vrsqrt.f32 %v865_v22 }
 0xb32   :  { %v1519_v23 = vpop.eup %1518 }
 0xb33   :  { %v867_v27 = vmul.f32 %v1519_v23, %v859_v10 }
 0xb35   :  { %v868_v29 = vmul.f32 %v867_v27, %v853_v25  ;;  %v1004_v25 = vld [vmem:[#allocation2 + $0x5f] ss:$0 sm:$0xff] }
 0xb37   :  { %v1761_v31 = vadd.f32 %v868_v29, %v854_v28 }
 0xb39   :  { %1386 = vmatmul.mubr.msk.f32.vlgmr.msra.gmra.mrb[18].mxu1 %vm49_vm1, %v1761_v31 }
 0xb3a   :  { %1473 = vmatpush3.bf16.msra.mxu1 %v1470_v35 }
 0xb3b   :  { %1475 = vmatprep.subr.bf16.mxu1 %v1474_v39 }
 0xb3e   :  { %1477 = vmatpush3.bf16.msra.mxu1 %v1474_v39 }
 0xb3f   :  { %1479 = vmatprep.subr.bf16.mxu1 %v1478_v43 }
 0xb42   :  { %1481 = vmatpush3.bf16.msra.mxu1 %v1478_v43 }
 0xb43   :  { %1483 = vmatprep.subr.bf16.mxu1 %v1482_v46 }
 0xb46   :  { %1485 = vmatpush3.bf16.msra.mxu1 %v1482_v46 }
 0xc0c   :  { %v944_v48 = vpop.f32.mrb[18].mxu1 }
 0xc0d   :  { %v1765_v49 = vadd.f32 %v944_v48, %v874_v47  ;;  %v1387_v50 = vpop.f32.mrb[19].mxu1 }
 0xc0f   :  { %v951_v51 = vrot.slane %v1765_v49, %v388_v36  ;;  %v955_v0 = vrot.slane %v1765_v49, %v392_v37 }
 0xc11   :  { %v956_v52 = vadd.f32 %v951_v51, %v1742_v15  ;;  %v957_v53 = vadd.f32 %v951_v51, %v1744_v24  ;;  %v958_v54 = vadd.f32 %v955_v0, %v1746_v26  ;;  %v959_v55 = vadd.f32 %v955_v0, %v1748_v30 }
 0xc13   :  { %v965_v56 = vmul.f32 0.044715, %v957_v53  ;;  %v964_v57 = vmul.f32 0.044715, %v956_v52  ;;  %v966_v58 = vmul.f32 0.044715, %v958_v54 }
 0xc14   :  { %v967_v59 = vmul.f32 0.044715, %v959_v55  ;;  %v960_v9 = vmul.f32 0.5, %v956_v52  ;;  %v961_v1 = vmul.f32 0.5, %v957_v53  ;;  %v962_v17 = vmul.f32 0.5, %v958_v54 }
 0xc15   :  { %v969_v60 = vmul.f32 %v965_v56, %v957_v53  ;;  %v968_v61 = vmul.f32 %v964_v57, %v956_v52  ;;  %v970_v62 = vmul.f32 %v966_v58, %v958_v54  ;;  %v963_v22 = vmul.f32 0.5, %v959_v55 }
 0xc16   :  { %v971_v36 = vmul.f32 %v967_v59, %v959_v55 }
 0xc17   :  { %v973_v63 = vmul.f32 %v969_v60, %v957_v53  ;;  %v972_v34 = vmul.f32 %v968_v61, %v956_v52  ;;  %v974_v2 = vmul.f32 %v970_v62, %v958_v54 }
 0xc18   :  { %v975_v37 = vmul.f32 %v971_v36, %v959_v55 }
 0xc19   :  { %v976_v3 = vadd.f32 %v972_v34, %v956_v52  ;;  %v977_v15 = vadd.f32 %v973_v63, %v957_v53  ;;  %v978_v4 = vadd.f32 %v974_v2, %v958_v54 }
 0xc1a   :  { %v979_v24 = vadd.f32 %v975_v37, %v959_v55 }
 0xc1b   :  { %v980_v5 = vmul.f32 0.7978846, %v976_v3  ;;  %v981_v26 = vmul.f32 0.7978846, %v977_v15  ;;  %v982_v6 = vmul.f32 0.7978846, %v978_v4 }
 0xc1c   :  { %v983_v30 = vmul.f32 0.7978846, %v979_v24 }
 0xc1d   :  { %1520 = vtanh.f32 %v980_v5 }
 0xc1e   :  { %1522 = vtanh.f32 %v981_v26 }
 0xc1f   :  { %1524 = vtanh.f32 %v982_v6 }
 0xc20   :  { %1526 = vtanh.f32 %v983_v30 }
 0xc27   :  { %v1521_v7 = vpop.eup %1520 }
 0xc28   :  { %v1523_v8 = vpop.eup %1522  ;;  %v988_v10 = vadd.f32 1.0, %v1521_v7 }
 0xc29   :  { %v1525_v11 = vpop.eup %1524  ;;  %v989_v12 = vadd.f32 1.0, %v1523_v8 }
 0xc2a   :  { %v1527_v14 = vpop.eup %1526  ;;  %v992_v16 = vmul.f32 %v988_v10, %v960_v9  ;;  %v990_v18 = vadd.f32 1.0, %v1525_v11 }
 0xc2b   :  { %v993_v19 = vmul.f32 %v989_v12, %v961_v1  ;;  %v991_v20 = vadd.f32 1.0, %v1527_v14  ;;  %v1106_v1 = vld [vmem:[#allocation2 + $0xc4] ss:$0 sm:$0xff]  ;;  %v1107_v14 = vld [vmem:[#allocation2 + $0xc5] ss:$0 sm:$0xff] }
 0xc2c   :  { %1404 = vmatprep.mubr.msk.f32.mxu1 %vm778_vm10, %v992_v16  ;;  %v994_v21 = vmul.f32 %v990_v18, %v962_v17  ;;  %v1168_v18 = vld [vmem:[#allocation2 + $0xc6] ss:$0 sm:$0xff] }
 0xc2d   :  { %1405 = vmatmul.mubr.msk.f32.vlgmr.msra.gmra.mrb[20].mxu1 %vm778_vm10, %v993_v19  ;;  %v995_v23 = vmul.f32 %v991_v20, %v963_v22 }
 0xc2e   :  { %1407 = vmatprep.mubr.msk.f32.mxu1 %vm778_vm10, %v994_v21 }
 0xc31   :  { %1408 = vmatmul.mubr.msk.f32.gmra.mrb[22].mxu1 %vm778_vm10, %v995_v23 }
 0xd00   :  { %v1406_v27 = vpop.f32.mrb[20].mxu1 }
 0xd01   :  { %v1089_v28 = vadd.f32 %v1406_v27, %v1004_v25  ;;  %v1083_v29 = vpop.f32.mrb[21].mxu1 }
 0xd02   :  { %v1084_v32 = vadd.f32 %v1083_v29, %v1004_v25 }
 0xd03   :  { %v1103_v40 = vadd.f32 %v1089_v28, %v1089_v28 }
 0xd04   :  { %v1409_v33 = vpop.f32.mrb[22].mxu1  ;;  %v1102_v35 = vadd.f32 %v1084_v32, %v1084_v32 }
 0xd05   :  { %v1099_v38 = vadd.f32 %v1409_v33, %v1004_v25  ;;  %v1093_v39 = vpop.f32.mrb[23].mxu1  ;;  %v1111_v41 = vsel %vm49_vm1, %v1103_v40, 0.0 }
 0xd06   :  { %v1094_v42 = vadd.f32 %v1093_v39, %v1004_v25  ;;  %1112 = vadd.xlane.f32.xlu0 %v1111_v41  ;;  %v1108_v45 = vsel %vm49_vm1, %v1102_v35, 0.0 }
 0xd07   :  { %v1105_v44 = vadd.f32 %v1099_v38, %v1099_v38 }
 0xd08   :  { %v1104_v43 = vadd.f32 %v1094_v42, %v1094_v42 }
 0xd09   :  { %v1117_v47 = vsel %vm49_vm1, %v1105_v44, 0.0 }
 0xd0a   :  { %1109 = vadd.xlane.f32.xlu0 %v1108_v45  ;;  %v1114_v46 = vsel %vm49_vm1, %v1104_v43, 0.0 }
 0xd0b   :  { %1115 = vadd.xlane.f32.xlu1 %v1114_v46  ;;  %v1186_v46 = vld [vmem:[#allocation2 + $0xc8] sm:$0xff] }
 0xd0e   :  { %1118 = vadd.xlane.f32.xlu0 %v1117_v47 }
 0xd93   :  { %v1113_v48 = vpop.xlane.xlu0 %1112 }
 0xd94   :  { %v1121_v50 = vmul.f32 0.03125, %v1113_v48  ;;  %v1185_v48 = vld [vmem:[#allocation2 + $0x60] sm:$0xff] }
 0xd96   :  { %v1125_v51 = vsub.f32 %v1103_v40, %v1121_v50 }
 0xd97   :  { %v1110_v0 = vpop.xlane.xlu0 %1109 }
 0xd98   :  { %v1120_v52 = vmul.f32 0.03125, %v1110_v0  ;;  %v1116_v53 = vpop.xlane.xlu1 %1115  ;;  %v1129_v54 = vmul.f32 %v1125_v51, %v1125_v51 }
 0xd99   :  { %v1122_v55 = vmul.f32 0.03125, %v1116_v53 }
 0xd9a   :  { %v1124_v56 = vsub.f32 %v1102_v35, %v1120_v52  ;;  %v1135_v57 = vsel %vm49_vm1, %v1129_v54, 0.0  ;;  %v1187_v52 = vld [vmem:[#allocation2 + $0x130] sm:$0xff] }
 0xd9b   :  { %v1126_v58 = vsub.f32 %v1104_v43, %v1122_v55  ;;  %1136 = vadd.xlane.f32.xlu0 %v1135_v57  ;;  %v1119_v59 = vpop.xlane.xlu0 %1118  ;;  %v1188_v55 = vld [vmem:[#allocation2 + $0x198] sm:$0xff] }
 0xd9c   :  { %v1123_v60 = vmul.f32 0.03125, %v1119_v59  ;;  %v1128_v61 = vmul.f32 %v1124_v56, %v1124_v56 }
 0xd9d   :  { %v1130_v63 = vmul.f32 %v1126_v58, %v1126_v58 }
 0xd9e   :  { %v1127_v62 = vsub.f32 %v1105_v44, %v1123_v60  ;;  %v1132_v36 = vsel %vm49_vm1, %v1128_v61, 0.0 }
 0xd9f   :  { %1133 = vadd.xlane.f32.xlu1 %v1132_v36  ;;  %v1138_v2 = vsel %vm49_vm1, %v1130_v63, 0.0 }
 0xda0   :  { %v1131_v34 = vmul.f32 %v1127_v62, %v1127_v62 }
 0xda2   :  { %v1141_v37 = vsel %vm49_vm1, %v1131_v34, 0.0 }
 0xda3   :  { %1139 = vadd.xlane.f32.xlu1 %v1138_v2  ;;  %1142 = vadd.xlane.f32.xlu0 %v1141_v37 }
 0xe28   :  { %v1137_v3 = vpop.xlane.xlu0 %1136 }
 0xe29   :  { %v1145_v15 = vmul.f32 0.03125, %v1137_v3 }
 0xe2b   :  { %v1149_v4 = vadd.f32 1e-12, %v1145_v15 }
 0xe2c   :  { %v1134_v24 = vpop.xlane.xlu1 %1133 }
 0xe2d   :  { %1528 = vrsqrt.f32 %v1149_v4  ;;  %v1144_v5 = vmul.f32 0.03125, %v1134_v24 }
 0xe2f   :  { %v1148_v26 = vadd.f32 1e-12, %v1144_v5 }
 0xe30   :  { %v1140_v6 = vpop.xlane.xlu1 %1139  ;;  %v1143_v30 = vpop.xlane.xlu0 %1142 }
 0xe31   :  { %1530 = vrsqrt.f32 %v1148_v26  ;;  %v1146_v7 = vmul.f32 0.03125, %v1140_v6  ;;  %v1147_v8 = vmul.f32 0.03125, %v1143_v30 }
 0xe33   :  { %v1150_v9 = vadd.f32 1e-12, %v1146_v7  ;;  %v1151_v10 = vadd.f32 1e-12, %v1147_v8 }
 0xe35   :  { %1532 = vrsqrt.f32 %v1150_v9 }
 0xe36   :  { %1534 = vrsqrt.f32 %v1151_v10 }
 0xe37   :  { %v1529_v11 = vpop.eup %1528 }
 0xe38   :  { %v1157_v12 = vmul.f32 %v1529_v11, %v1125_v51 }
 0xe3a   :  { %v1161_v16 = vmul.f32 %v1157_v12, %v1106_v1 }
 0xe3b   :  { %v1531_v17 = vpop.eup %1530 }
 0xe3c   :  { %v1165_v19 = vadd.f32 %v1161_v16, %v1107_v14  ;;  %v1156_v20 = vmul.f32 %v1531_v17, %v1124_v56 }
 0xe3e   :  { %v1170_v21 = vmul.f32 %v1168_v18, %v1165_v19  ;;  %v1160_v22 = vmul.f32 %v1156_v20, %v1106_v1 }
 0xe3f   :  { %v1533_v23 = vpop.eup %1532 }
 0xe40   :  { %v1535_v25 = vpop.eup %1534  ;;  %v1176_v27 = vsel %vm49_vm1, %v1170_v21, 0.0  ;;  %v1164_v28 = vadd.f32 %v1160_v22, %v1107_v14  ;;  %v1158_v29 = vmul.f32 %v1533_v23, %v1126_v58 }
 0xe41   :  { %1177 = vadd.xlane.f32.xlu0 %v1176_v27  ;;  %v1159_v32 = vmul.f32 %v1535_v25, %v1127_v62 }
 0xe42   :  { %v1169_v40 = vmul.f32 %v1168_v18, %v1164_v28  ;;  %v1162_v33 = vmul.f32 %v1158_v29, %v1106_v1 }
 0xe43   :  { %v1163_v35 = vmul.f32 %v1159_v32, %v1106_v1 }
 0xe44   :  { %v1173_v38 = vsel %vm49_vm1, %v1169_v40, 0.0  ;;  %v1166_v39 = vadd.f32 %v1162_v33, %v1107_v14 }
 0xe45   :  { %1174 = vadd.xlane.f32.xlu1 %v1173_v38  ;;  %v1167_v41 = vadd.f32 %v1163_v35, %v1107_v14 }
 0xe46   :  { %v1171_v42 = vmul.f32 %v1168_v18, %v1166_v39 }
 0xe47   :  { %v1172_v43 = vmul.f32 %v1168_v18, %v1167_v41 }
 0xe48   :  { %v1179_v44 = vsel %vm49_vm1, %v1171_v42, 0.0 }
 0xe49   :  { %1180 = vadd.xlane.f32.xlu1 %v1179_v44  ;;  %v1182_v45 = vsel %vm49_vm1, %v1172_v43, 0.0 }
 0xe4a   :  { %1183 = vadd.xlane.f32.xlu0 %v1182_v45 }
 0xece   :  { %v1178_v47 = vpop.xlane.xlu0 %1177 }
 0xecf   :  { %v1190_v50 = vmul.f32 %v1186_v46, %v1178_v47 }
 0xed1   :  { %v1195_v53 = vsel %vm1193_vm11, %v1190_v50, 0.0 }
 0xed2   :  { %v1175_v51 = vpop.xlane.xlu1 %1174 }
 0xed3   :  { %v1189_v0 = vmul.f32 %v1185_v48, %v1175_v51 }
 0xed5   :  { %v1194_v54 = vsel %vm1193_vm11, %v1189_v0, 0.0 }
 0xed6   :  { %v1196_v56 = vadd.f32 %v1195_v53, %v1194_v54  ;;  %v1181_v57 = vpop.xlane.xlu1 %1180 }
 0xed7   :  { %v1191_v58 = vmul.f32 %v1187_v52, %v1181_v57  ;;  %v1184_v59 = vpop.xlane.xlu0 %1183 }
 0xed8   :  { %v1197_v60 = vrot.slane %v1196_v56, 4  ;;  %v1192_v61 = vmul.f32 %v1188_v55, %v1184_v59 }
 0xed9   :  { %v1203_v62 = vsel %vm1193_vm11, %v1191_v58, 0.0 }
 0xeda   :  { %v1198_v36 = vadd.f32 %v1197_v60, %v1196_v56  ;;  %v1204_v63 = vsel %vm1193_vm11, %v1192_v61, 0.0 }
 0xedb   :  { %v1205_v34 = vadd.f32 %v1204_v63, %v1203_v62 }
 0xedc   :  { %v1199_v2 = vrot.slane %v1198_v36, 2 }
 0xedd   :  { %v1206_v37 = vrot.slane %v1205_v34, 4 }
 0xede   :  { %v1200_v3 = vadd.f32 %v1199_v2, %v1198_v36 }
 0xedf   :  { %v1207_v15 = vadd.f32 %v1206_v37, %v1205_v34 }
 0xee0   :  { %v1201_v5 = vrot.slane %v1200_v3, 1 }
 0xee1   :  { %v1208_v4 = vrot.slane %v1207_v15, 2 }
 0xee2   :  { %v1202_v6 = vadd.f32 %v1201_v5, %v1200_v3 }
 0xee3   :  { %v1209_v24 = vadd.f32 %v1208_v4, %v1207_v15 }
 0xee5   :  { %v1210_v26 = vrot.slane %v1209_v24, 1 }
 0xee7   :  { %v1211_v30 = vadd.f32 %v1210_v26, %v1209_v24 }
 0xee9   :  { %v1212_v7 = vsel %vm543_vm8, %v1202_v6, %v1211_v30 }
 0xeea   :  { %1214 = vrot.lane.b32.xlu1 %v1212_v7, %s1570_s0 }
 0xeee   :  { %1223 = vrot.lane.b32.xlu1 %v1765_v49, %s1571_s14 }
 0xef2   :  { %1226 = vrot.lane.b32.xlu1 %v1761_v31, %s1572_s15 }
 0xf5c   :  { %v1215_v8 = vpop.permute.xlu1 %1214 }
 0xf5d   :  { %v1217_v9 = vsel %vm280_vm0, -inf, %v1215_v8 }
 0xf5e   :  { %1219 = vrot.lane.b32.xlu0 %v1217_v9, %s1573_s16 }
 0xf60   :  { %v1224_v10 = vpop.permute.xlu1 %1223 }
 0xf64   :  { %v1227_v1 = vpop.permute.xlu1 %1226 }
 0xfd0   :  { %v1220_v11 = vpop.permute.xlu0 %1219 }
 0xfd1   :  { %v1229_v12 = vsel %vm1193_vm11, %v1220_v11, %v1224_v10 }
 0xfd2   :  { %v1231_v14 = vsel %vm1230_vm12, %v1229_v12, %v1227_v1 }
 0xfd3   :  { %v1233_v16 = vsel %vm1232_vm13, %v1231_v14, 0.0 }
 0xfd4   :  { %1234 = vst [vmem:[%s1808_s2] sm:$0x3] %v1233_v16 }
 0xfd5   :  { %1239 = vsyncpa [#allocation3], 1 }

</bundles_post_ra>
